<compile_context>
chip_gen: v7x
topology: tpu7x:2x2x1
jax: 0.10.0
libtpu: 0.0.40
codegen_flags: <defaults>
</compile_context>

<pallas_src>
import jax
import jax.numpy as jnp
from jax.experimental import pallas as pl
from jax.experimental.pallas import tpu as pltpu


def _round_up(x, m):
    return (x + m - 1) // m * m


def _make_kernel(L, T, Bt, Hp, n_mlp):
    """Fused LSTM (+hoisted layer-0 projection) + MLP kernel for one batch tile.

    Kernel ref order (all full VMEM blocks):
      x (T*Bt, D_in) bf16 [time-major rows for this batch tile], feat (Bt, E) bf16,
      w_ih0 (D_in, 4Hp) bf16, w_hh0 (Hp, 4Hp) bf16, b0 (1, 4Hp) f32,
      [w_ih_l (Hp, 4Hp) bf16, w_hh_l (Hp, 4Hp) bf16, b_l (1, 4Hp) f32] for l=1..L-1,
      w1_h (Hp, M1) bf16, w1_f (E, M1) bf16, b1 (1, M1) f32,
      [w_j bf16, b_j f32] for remaining MLP layers (last padded to 128 lanes),
      out (Bt, out_pad) f32, scratch xp (T*Bt, 4Hp) f32.
    Gate column order is [i, f, o, g].
    """
    G = 4 * Hp
    n_in = 2 + 3 + 3 * (L - 1) + 3 + 2 * (n_mlp - 1)
    f32 = jnp.float32
    bf16 = jnp.bfloat16

    def kernel(*refs):
        in_refs = refs[:n_in]
        out_ref = refs[n_in]
        xp_scr = refs[n_in + 1]                 # (T*Bt, 4Hp) f32 layer-0 gate preacts

        x_ref, feat_ref = in_refs[0], in_refs[1]
        w_ih0_ref, w_hh0_ref, b0_ref = in_refs[2], in_refs[3], in_refs[4]
        stk_refs = in_refs[5:5 + 3 * (L - 1)]
        mlp_refs = in_refs[5 + 3 * (L - 1):]

        # ---- pre-pass: layer-0 input projection for ALL timesteps at once ----
        # One (T*Bt, D_in) @ (D_in, 4Hp) bf16 matmul (f32 accumulate), bias folded.
        xp_scr[...] = (jnp.dot(x_ref[...], w_ih0_ref[...],
                               preferred_element_type=f32) + b0_ref[...])

        # Only the (tiny) bias broadcasts are hoisted; weights are re-read from
        # their Refs inside step() to keep vreg pressure bounded.
        b_stk = [jnp.broadcast_to(stk_refs[3 * i + 2][...], (Bt, G))
                 for i in range(L - 1)]

        def lstm_cell(gates, c_prev):
            # gate order [i, f, o, g]: one sigmoid over 3Hp lanes + one tanh.
            sg = jax.nn.sigmoid(gates[:, :3 * Hp])
            g_g = jnp.tanh(gates[:, 3 * Hp:])
            i_g = sg[:, 0:Hp]
            f_g = sg[:, Hp:2 * Hp]
            o_g = sg[:, 2 * Hp:3 * Hp]
            c_new = f_g * c_prev + i_g * g_g
            h_new = o_g * jnp.tanh(c_new)
            return h_new, c_new

        def step(t, carry):
            hs = list(carry[:L])
            cs = list(carry[L:])
            # layer 0: only the recurrent h @ W_hh matmul is on the serial chain
            row = pl.multiple_of(t * Bt, 8)
            g = xp_scr[pl.ds(row, Bt), :] + jnp.dot(
                hs[0].astype(bf16), w_hh0_ref[...], preferred_element_type=f32)
            hs[0], cs[0] = lstm_cell(g, cs[0])
            inp = hs[0]
            # layers > 0: two accumulated MXU pushes (no lane-axis concat)
            for l in range(1, L):
                w_ih = stk_refs[3 * (l - 1)][...]
                w_hh = stk_refs[3 * (l - 1) + 1][...]
                g = (jnp.dot(inp.astype(bf16), w_ih, preferred_element_type=f32)
                     + jnp.dot(hs[l].astype(bf16), w_hh, preferred_element_type=f32)
                     + b_stk[l - 1])
                hs[l], cs[l] = lstm_cell(g, cs[l])
                inp = hs[l]
            return tuple(hs) + tuple(cs)

        zeros = jnp.zeros((Bt, Hp), f32)                         # h0 = c0 = 0
        final = jax.lax.fori_loop(0, T, step, tuple([zeros] * (2 * L)),
                                  unroll=min(8, T))
        h_last = final[L - 1]

        # ---- MLP (eval mode): split first layer (no concat), ReLU between
        #      hidden layers, no activation after the (lane-padded) output ----
        w1_h_ref, w1_f_ref, b1_ref = mlp_refs[0], mlp_refs[1], mlp_refs[2]
        z = (jnp.dot(h_last.astype(bf16), w1_h_ref[...], preferred_element_type=f32)
             + jnp.dot(feat_ref[...], w1_f_ref[...], preferred_element_type=f32)
             + b1_ref[...])
        rest = mlp_refs[3:]
        for j in range(len(rest) // 2):
            z = jnp.maximum(z, 0.0)
            z = (jnp.dot(z.astype(bf16), rest[2 * j][...],
                         preferred_element_type=f32) + rest[2 * j + 1][...])
        out_ref[...] = z.astype(out_ref.dtype)

    return kernel


def lstm_mlp_forward(sequences, features, lstm_params, mlp_params):
    """sequences: (B, T, input_size) batch-first (PyTorch convention).
       features : (B, mlp_extra_input_size).
       lstm_params: list of (w_ih, w_hh, b_ih, b_hh) in PyTorch layout
                    (w_ih: (4H, in), w_hh: (4H, H), b_*: (4H,)), gate order [i,f,g,o].
       mlp_params : list of (w, b) in PyTorch nn.Linear layout (w: (out, in), b: (out,)).
       Returns the squeezed MLP output (matching `self._mlp(fc_input).squeeze()`)."""
    B, T, D_in = sequences.shape
    L = len(lstm_params)
    H = lstm_params[0][1].shape[1]            # w_hh: (4H, H)
    E = features.shape[1]
    out_size = mlp_params[-1][0].shape[0]
    n_mlp = len(mlp_params)

    f32, bf16 = jnp.float32, jnp.bfloat16

    # --- padding: Hp so 4*Hp % 128 == 0 and Hp % 8 == 0; batch to sublane
    #     multiples; output to 128 lanes; split batch in 2 tiles when possible ---
    Hp = _round_up(max(H, 8), 32)
    G = 4 * Hp
    B_pad = _round_up(max(B, 8), 8)
    if B_pad >= 16:
        B_pad = _round_up(B_pad, 16)
        Bt = B_pad // 2            # 2 batch tiles -> one per v7x TensorCore
    else:
        Bt = B_pad
    n_bt = B_pad // Bt
    out_pad = _round_up(max(out_size, 128), 128)

    # --- repack LSTM weights: transpose to (in, 4Hp), permute gates to
    #     [i, f, o, g], zero-pad each gate block H -> Hp, fold b_ih + b_hh,
    #     zero-pad hidden input rows H -> Hp, cast weights to bf16 ---
    def repack_gate_w(w_pt, pad_rows_to=None):
        w = jnp.asarray(w_pt, f32)                    # (4H, in)
        in_sz = w.shape[1]
        i_b, f_b, g_b, o_b = (w[0 * H:1 * H], w[1 * H:2 * H],
                              w[2 * H:3 * H], w[3 * H:4 * H])
        out = jnp.zeros((G, in_sz), f32)
        for k, blk in enumerate((i_b, f_b, o_b, g_b)):
            out = out.at[k * Hp:k * Hp + H].set(blk)
        out = out.T                                   # (in, 4Hp)
        if pad_rows_to is not None and pad_rows_to != in_sz:
            out = jnp.zeros((pad_rows_to, G), f32).at[:in_sz].set(out)
        return out.astype(bf16)

    def repack_gate_b(b_ih, b_hh):
        b = jnp.asarray(b_ih, f32) + jnp.asarray(b_hh, f32)
        i_b, f_b, g_b, o_b = (b[0:H], b[H:2 * H], b[2 * H:3 * H], b[3 * H:4 * H])
        out = jnp.zeros((G,), f32)
        for k, blk in enumerate((i_b, f_b, o_b, g_b)):
            out = out.at[k * Hp:k * Hp + H].set(blk)
        return out.reshape(1, G)                      # keep biases in f32

    w_ih0, w_hh0, b_ih0, b_hh0 = lstm_params[0]
    w_ih0_k = repack_gate_w(w_ih0)                    # (D_in, 4Hp) bf16
    w_hh0_k = repack_gate_w(w_hh0, pad_rows_to=Hp)    # (Hp, 4Hp) bf16
    b0_k = repack_gate_b(b_ih0, b_hh0)                # (1, 4Hp) f32
    stacked = []
    for l in range(1, L):
        w_ih, w_hh, b_ih, b_hh = lstm_params[l]
        stacked += [repack_gate_w(w_ih, pad_rows_to=Hp),
                    repack_gate_w(w_hh, pad_rows_to=Hp),
                    repack_gate_b(b_ih, b_hh)]

    # --- repack MLP: transpose to (in, out); pad last layer to lane-dense width;
    #     split first layer so no in-kernel concat is needed; weights bf16 ---
    wts = [jnp.asarray(w, f32).T for (w, _) in mlp_params]          # (in, out)
    bts = [jnp.asarray(b, f32).reshape(1, -1) for (_, b) in mlp_params]
    last = n_mlp - 1
    wts[last] = jnp.zeros((wts[last].shape[0], out_pad),
                          f32).at[:, :out_size].set(wts[last])
    bts[last] = jnp.zeros((1, out_pad), f32).at[:, :out_size].set(bts[last])
    M1 = wts[0].shape[1]
    w1_h = jnp.zeros((Hp, M1), f32).at[:H].set(wts[0][:H]).astype(bf16)   # pads rows H->Hp
    w1_f = wts[0][H:].astype(bf16)                                        # (E, M1)
    mlp_flat = [w1_h, w1_f, bts[0]]
    for j in range(1, n_mlp):
        mlp_flat += [wts[j].astype(bf16), bts[j]]

    # --- input packing: pad batch, go time-major, lay rows out per batch tile
    #     ([tile][t][b in tile]) so each grid step gets a contiguous slab ---
    seq_p = jnp.zeros((B_pad, T, D_in), f32).at[:B].set(
        jnp.asarray(sequences, f32))
    feat_p = jnp.zeros((B_pad, E), f32).at[:B].set(jnp.asarray(features, f32))
    x_tiles = jnp.transpose(seq_p, (1, 0, 2)).reshape(T, n_bt, Bt, D_in)
    x_k = jnp.transpose(x_tiles, (1, 0, 2, 3)).reshape(n_bt * T * Bt,
                                                       D_in).astype(bf16)
    feat_k = feat_p.astype(bf16)

    inputs = [x_k, feat_k, w_ih0_k, w_hh0_k, b0_k] + stacked + mlp_flat

    def _const_spec(a):
        nd = a.ndim
        return pl.BlockSpec(a.shape, lambda i, _nd=nd: (0,) * _nd)

    in_specs = ([pl.BlockSpec((T * Bt, D_in), lambda i: (i, 0)),
                 pl.BlockSpec((Bt, E), lambda i: (i, 0))]
                + [_const_spec(a) for a in inputs[2:]])
    out_specs = pl.BlockSpec((Bt, out_pad), lambda i: (i, 0))

    # --- VMEM budget from the actual footprint (double-buffer headroom) ---
    def _nbytes(a):
        return int(a.size) * jnp.dtype(a.dtype).itemsize
    block_bytes = T * Bt * D_in * 2 + Bt * E * 2 + Bt * out_pad * 4
    weight_bytes = sum(_nbytes(a) for a in inputs[2:])
    scratch_bytes = T * Bt * G * 4
    need = 2 * (block_bytes + weight_bytes) + scratch_bytes + (4 << 20)
    vmem_limit = int(min(100 << 20, max(16 << 20, need)))

    kernel = _make_kernel(L, T, Bt, Hp, n_mlp)
    out = pl.pallas_call(
        kernel,
        out_shape=jax.ShapeDtypeStruct((B_pad, out_pad), jnp.float32),
        grid=(n_bt,),
        in_specs=in_specs,
        out_specs=out_specs,
        scratch_shapes=[pltpu.VMEM((T * Bt, G), jnp.float32)],
        compiler_params=pltpu.CompilerParams(
            dimension_semantics=("parallel",),
            vmem_limit_bytes=vmem_limit),
    )(*inputs)

    return jnp.squeeze(out[:B, :out_size])


def _reference(sequences, features, lstm_params, mlp_params):
    """Pure-JAX f32 reference of the PyTorch forward (eval mode)."""
    B, T, _ = sequences.shape
    L = len(lstm_params)
    H = lstm_params[0][1].shape[1]
    hp = jax.lax.Precision.HIGHEST
    h = [jnp.zeros((B, H), jnp.float32) for _ in range(L)]
    c = [jnp.zeros((B, H), jnp.float32) for _ in range(L)]
    for t in range(T):
        inp = sequences[:, t, :]
        for l in range(L):
            w_ih, w_hh, b_ih, b_hh = lstm_params[l]
            g = (jnp.dot(inp, w_ih.T, precision=hp)
                 + jnp.dot(h[l], w_hh.T, precision=hp) + b_ih + b_hh)
            i_g = jax.nn.sigmoid(g[:, :H])
            f_g = jax.nn.sigmoid(g[:, H:2 * H])
            g_g = jnp.tanh(g[:, 2 * H:3 * H])
            o_g = jax.nn.sigmoid(g[:, 3 * H:])
            c[l] = f_g * c[l] + i_g * g_g
            h[l] = o_g * jnp.tanh(c[l])
            inp = h[l]
    z = jnp.concatenate([h[L - 1], features], axis=1)
    n = len(mlp_params)
    for j, (w, b) in enumerate(mlp_params):
        z = jnp.dot(z, w.T, precision=hp) + b
        if j < n - 1:
            z = jnp.maximum(z, 0.0)
    return jnp.squeeze(z)


def init_params(key, input_size, hidden_size, n_layers,
                mlp_extra, mlp_hidden, mlp_n_hidden, output_size):
    """Deterministic synthetic init, PyTorch shapes (nn.LSTM / nn.Linear layout)."""
    lstm_params = []
    k = key
    scale = 1.0 / float(hidden_size) ** 0.5
    for l in range(n_layers):
        in_sz = input_size if l == 0 else hidden_size
        k, k1, k2, k3, k4 = jax.random.split(k, 5)
        w_ih = jax.random.uniform(k1, (4 * hidden_size, in_sz), jnp.float32, -scale, scale)
        w_hh = jax.random.uniform(k2, (4 * hidden_size, hidden_size), jnp.float32, -scale, scale)
        b_ih = jax.random.uniform(k3, (4 * hidden_size,), jnp.float32, -scale, scale)
        b_hh = jax.random.uniform(k4, (4 * hidden_size,), jnp.float32, -scale, scale)
        lstm_params.append((w_ih, w_hh, b_ih, b_hh))

    sizes = [hidden_size + mlp_extra] + [mlp_hidden] * mlp_n_hidden + [output_size]
    mlp_params = []
    for i in range(len(sizes) - 1):
        k, k1, k2 = jax.random.split(k, 3)
        sc = 1.0 / float(sizes[i]) ** 0.5
        w = jax.random.uniform(k1, (sizes[i + 1], sizes[i]), jnp.float32, -sc, sc)
        b = jax.random.uniform(k2, (sizes[i + 1],), jnp.float32, -sc, sc)
        mlp_params.append((w, b))
    return lstm_params, mlp_params


if __name__ == "__main__":
    B, T = 4, 8
    input_size, hidden_size, lstm_n_layers = 16, 32, 2
    mlp_extra_input_size, mlp_hidden_layer_size, mlp_n_hidden_layers, output_size = 8, 64, 2, 1

    key = jax.random.PRNGKey(0)
    k_seq, k_feat, k_param = jax.random.split(key, 3)
    sequences = jax.random.normal(k_seq, (B, T, input_size), jnp.float32)
    features = jax.random.normal(k_feat, (B, mlp_extra_input_size), jnp.float32)

    lstm_params, mlp_params = init_params(
        k_param, input_size, hidden_size, lstm_n_layers,
        mlp_extra_input_size, mlp_hidden_layer_size, mlp_n_hidden_layers, output_size)

    out = lstm_mlp_forward(sequences, features, lstm_params, mlp_params)
    jax.block_until_ready(out)
    assert out.shape == (B,), out.shape

    ref = _reference(sequences, features, lstm_params, mlp_params)
    jax.block_until_ready(ref)
    err = float(jnp.max(jnp.abs(out - ref)))
    # bf16 MXU operands with f32 accumulation vs. an f32 HIGHEST-precision reference
    assert err < 3e-2, f"mismatch vs pure-JAX reference: {err}"

    print("KERNEL_OK")
</pallas_src>

<mosaic_0001>
module attributes {stable_mosaic.version = 11 : i64} {
  func.func @kernel(%arg0: i32, %arg1: memref<64x16xbf16, #tpu.memory_space<vmem>>, %arg2: memref<8x8xbf16, #tpu.memory_space<vmem>>, %arg3: memref<16x128xbf16, #tpu.memory_space<vmem>>, %arg4: memref<32x128xbf16, #tpu.memory_space<vmem>>, %arg5: memref<1x128xf32, #tpu.memory_space<vmem>>, %arg6: memref<32x128xbf16, #tpu.memory_space<vmem>>, %arg7: memref<32x128xbf16, #tpu.memory_space<vmem>>, %arg8: memref<1x128xf32, #tpu.memory_space<vmem>>, %arg9: memref<32x64xbf16, #tpu.memory_space<vmem>>, %arg10: memref<8x64xbf16, #tpu.memory_space<vmem>>, %arg11: memref<1x64xf32, #tpu.memory_space<vmem>>, %arg12: memref<64x64xbf16, #tpu.memory_space<vmem>>, %arg13: memref<1x64xf32, #tpu.memory_space<vmem>>, %arg14: memref<64x128xbf16, #tpu.memory_space<vmem>>, %arg15: memref<1x128xf32, #tpu.memory_space<vmem>>, %arg16: memref<8x128xf32, #tpu.memory_space<vmem>>, %arg17: memref<64x128xf32, #tpu.memory_space<vmem>>) attributes {dimension_semantics = [#tpu.dimension_semantics<parallel>], iteration_bounds = array<i64: 1>, scalar_prefetch = 0 : i64, scratch_operands = 1 : i64, tpu.core_type = #tpu.core_type<tc>, window_params = [{transform_indices = @transform_0, window_bounds = array<i64: 64, 16>}, {transform_indices = @transform_1, window_bounds = array<i64: 8, 8>}, {pipeline_mode = #tpu.pipeline_mode<synchronous>, transform_indices = @transform_2, window_bounds = array<i64: 16, 128>}, {pipeline_mode = #tpu.pipeline_mode<synchronous>, transform_indices = @transform_3, window_bounds = array<i64: 32, 128>}, {pipeline_mode = #tpu.pipeline_mode<synchronous>, transform_indices = @transform_4, window_bounds = array<i64: 1, 128>}, {pipeline_mode = #tpu.pipeline_mode<synchronous>, transform_indices = @transform_5, window_bounds = array<i64: 32, 128>}, {pipeline_mode = #tpu.pipeline_mode<synchronous>, transform_indices = @transform_6, window_bounds = array<i64: 32, 128>}, {pipeline_mode = #tpu.pipeline_mode<synchronous>, transform_indices = @transform_7, window_bounds = array<i64: 1, 128>}, {pipeline_mode = #tpu.pipeline_mode<synchronous>, transform_indices = @transform_8, window_bounds = array<i64: 32, 64>}, {pipeline_mode = #tpu.pipeline_mode<synchronous>, transform_indices = @transform_9, window_bounds = array<i64: 8, 64>}, {pipeline_mode = #tpu.pipeline_mode<synchronous>, transform_indices = @transform_10, window_bounds = array<i64: 1, 64>}, {pipeline_mode = #tpu.pipeline_mode<synchronous>, transform_indices = @transform_11, window_bounds = array<i64: 64, 64>}, {pipeline_mode = #tpu.pipeline_mode<synchronous>, transform_indices = @transform_12, window_bounds = array<i64: 1, 64>}, {pipeline_mode = #tpu.pipeline_mode<synchronous>, transform_indices = @transform_13, window_bounds = array<i64: 64, 128>}, {pipeline_mode = #tpu.pipeline_mode<synchronous>, transform_indices = @transform_14, window_bounds = array<i64: 1, 128>}, {transform_indices = @transform_15, window_bounds = array<i64: 8, 128>}]} {
    %c0 = arith.constant 0 : index
    %c0_0 = arith.constant 0 : index
    %0 = vector.load %arg1[%c0, %c0_0] : memref<64x16xbf16, #tpu.memory_space<vmem>>, vector<64x16xbf16>
    %c0_1 = arith.constant 0 : index
    %c0_2 = arith.constant 0 : index
    %1 = vector.load %arg3[%c0_1, %c0_2] : memref<16x128xbf16, #tpu.memory_space<vmem>>, vector<16x128xbf16>
    %cst = arith.constant dense<0.000000e+00> : vector<64x128xf32>
    %2 = tpu.matmul %0, %1, %cst {dimension_numbers = #tpu.dot_dimension_numbers<[1], [0], [0], [1], [0, 0, 1, 1], [], []>} : vector<64x16xbf16>, vector<16x128xbf16>, vector<64x128xf32> -> vector<64x128xf32>
    %c0_3 = arith.constant 0 : index
    %c0_4 = arith.constant 0 : index
    %3 = vector.load %arg5[%c0_3, %c0_4] : memref<1x128xf32, #tpu.memory_space<vmem>>, vector<1x128xf32>
    %4 = vector.broadcast %3 : vector<1x128xf32> to vector<64x128xf32>
    %5 = arith.addf %2, %4 : vector<64x128xf32>
    %c0_5 = arith.constant 0 : index
    %c0_6 = arith.constant 0 : index
    %6 = vector.load %arg17[%c0_5, %c0_6] : memref<64x128xf32, #tpu.memory_space<vmem>>, vector<64x128xf32>
    tpu.vector_store %arg17[%c0_5, %c0_6], %5 {strides = array<i32>} : memref<64x128xf32, #tpu.memory_space<vmem>>, vector<64x128xf32>,
    %c0_7 = arith.constant 0 : index
    %c0_8 = arith.constant 0 : index
    %7 = vector.load %arg8[%c0_7, %c0_8] : memref<1x128xf32, #tpu.memory_space<vmem>>, vector<1x128xf32>
    %8 = vector.shape_cast %7 : vector<1x128xf32> to vector<1x128xf32>
    %9 = vector.broadcast %8 : vector<1x128xf32> to vector<8x128xf32>
    %cst_9 = arith.constant 0.000000e+00 : f32
    %10 = vector.broadcast %cst_9 : f32 to vector<8x32xf32>
    %c0_i32 = arith.constant 0 : i32
    %c8_i32 = arith.constant 8 : i32
    %11 = arith.muli %c0_i32, %c8_i32 : i32
    %12 = tpu.assume_multiple %11, 8 : i32
    %13 = arith.index_cast %12 : i32 to index
    %c0_10 = arith.constant 0 : index
    %14 = vector.load %arg17[%13, %c0_10] : memref<64x128xf32, #tpu.memory_space<vmem>>, vector<8x128xf32>
    %15 = arith.truncf %10 : vector<8x32xf32> to vector<8x32xbf16>
    %c0_11 = arith.constant 0 : index
    %c0_12 = arith.constant 0 : index
    %16 = vector.load %arg4[%c0_11, %c0_12] : memref<32x128xbf16, #tpu.memory_space<vmem>>, vector<32x128xbf16>
    %cst_13 = arith.constant dense<0.000000e+00> : vector<8x128xf32>
    %17 = tpu.matmul %15, %16, %cst_13 {dimension_numbers = #tpu.dot_dimension_numbers<[1], [0], [0], [1], [0, 0, 1, 1], [], []>} : vector<8x32xbf16>, vector<32x128xbf16>, vector<8x128xf32> -> vector<8x128xf32>
    %18 = arith.addf %14, %17 : vector<8x128xf32>
    %19 = vector.extract_strided_slice %18 {offsets = [0, 0], sizes = [8, 96], strides = [1, 1]} : vector<8x128xf32> to vector<8x96xf32>
    %20 = arith.negf %19 : vector<8x96xf32>
    %21 = math.exp %20 : vector<8x96xf32>
    %cst_14 = arith.constant 1.000000e+00 : f32
    %22 = vector.broadcast %cst_14 : f32 to vector<8x96xf32>
    %23 = arith.addf %22, %21 : vector<8x96xf32>
    %24 = arith.divf %22, %23 : vector<8x96xf32>
    %25 = vector.extract_strided_slice %18 {offsets = [0, 96], sizes = [8, 32], strides = [1, 1]} : vector<8x128xf32> to vector<8x32xf32>
    %26 = math.tanh %25 : vector<8x32xf32>
    %27 = vector.extract_strided_slice %24 {offsets = [0, 0], sizes = [8, 32], strides = [1, 1]} : vector<8x96xf32> to vector<8x32xf32>
    %28 = vector.extract_strided_slice %24 {offsets = [0, 32], sizes = [8, 32], strides = [1, 1]} : vector<8x96xf32> to vector<8x32xf32>
    %29 = vector.extract_strided_slice %24 {offsets = [0, 64], sizes = [8, 32], strides = [1, 1]} : vector<8x96xf32> to vector<8x32xf32>
    %30 = arith.mulf %28, %10 : vector<8x32xf32>
    %31 = arith.mulf %27, %26 : vector<8x32xf32>
    %32 = arith.addf %30, %31 : vector<8x32xf32>
    %33 = math.tanh %32 : vector<8x32xf32>
    %34 = arith.mulf %29, %33 : vector<8x32xf32>
    %c0_15 = arith.constant 0 : index
    %c0_16 = arith.constant 0 : index
    %35 = vector.load %arg6[%c0_15, %c0_16] : memref<32x128xbf16, #tpu.memory_space<vmem>>, vector<32x128xbf16>
    %c0_17 = arith.constant 0 : index
    %c0_18 = arith.constant 0 : index
    %36 = vector.load %arg7[%c0_17, %c0_18] : memref<32x128xbf16, #tpu.memory_space<vmem>>, vector<32x128xbf16>
    %37 = arith.truncf %34 : vector<8x32xf32> to vector<8x32xbf16>
    %cst_19 = arith.constant dense<0.000000e+00> : vector<8x128xf32>
    %38 = tpu.matmul %37, %35, %cst_19 {dimension_numbers = #tpu.dot_dimension_numbers<[1], [0], [0], [1], [0, 0, 1, 1], [], []>} : vector<8x32xbf16>, vector<32x128xbf16>, vector<8x128xf32> -> vector<8x128xf32>
    %39 = arith.truncf %10 : vector<8x32xf32> to vector<8x32xbf16>
    %cst_20 = arith.constant dense<0.000000e+00> : vector<8x128xf32>
    %40 = tpu.matmul %39, %36, %cst_20 {dimension_numbers = #tpu.dot_dimension_numbers<[1], [0], [0], [1], [0, 0, 1, 1], [], []>} : vector<8x32xbf16>, vector<32x128xbf16>, vector<8x128xf32> -> vector<8x128xf32>
    %41 = arith.addf %38, %40 : vector<8x128xf32>
    %42 = arith.addf %41, %9 : vector<8x128xf32>
    %43 = vector.extract_strided_slice %42 {offsets = [0, 0], sizes = [8, 96], strides = [1, 1]} : vector<8x128xf32> to vector<8x96xf32>
    %44 = arith.negf %43 : vector<8x96xf32>
    %45 = math.exp %44 : vector<8x96xf32>
    %cst_21 = arith.constant 1.000000e+00 : f32
    %46 = vector.broadcast %cst_21 : f32 to vector<8x96xf32>
    %47 = arith.addf %46, %45 : vector<8x96xf32>
    %48 = arith.divf %46, %47 : vector<8x96xf32>
    %49 = vector.extract_strided_slice %42 {offsets = [0, 96], sizes = [8, 32], strides = [1, 1]} : vector<8x128xf32> to vector<8x32xf32>
    %50 = math.tanh %49 : vector<8x32xf32>
    %51 = vector.extract_strided_slice %48 {offsets = [0, 0], sizes = [8, 32], strides = [1, 1]} : vector<8x96xf32> to vector<8x32xf32>
    %52 = vector.extract_strided_slice %48 {offsets = [0, 32], sizes = [8, 32], strides = [1, 1]} : vector<8x96xf32> to vector<8x32xf32>
    %53 = vector.extract_strided_slice %48 {offsets = [0, 64], sizes = [8, 32], strides = [1, 1]} : vector<8x96xf32> to vector<8x32xf32>
    %54 = arith.mulf %52, %10 : vector<8x32xf32>
    %55 = arith.mulf %51, %50 : vector<8x32xf32>
    %56 = arith.addf %54, %55 : vector<8x32xf32>
    %57 = math.tanh %56 : vector<8x32xf32>
    %58 = arith.mulf %53, %57 : vector<8x32xf32>
    %c1_i32 = arith.constant 1 : i32
    %c8_i32_22 = arith.constant 8 : i32
    %59 = arith.muli %c1_i32, %c8_i32_22 : i32
    %60 = tpu.assume_multiple %59, 8 : i32
    %61 = arith.index_cast %60 : i32 to index
    %c0_23 = arith.constant 0 : index
    %62 = vector.load %arg17[%61, %c0_23] : memref<64x128xf32, #tpu.memory_space<vmem>>, vector<8x128xf32>
    %63 = arith.truncf %34 : vector<8x32xf32> to vector<8x32xbf16>
    %c0_24 = arith.constant 0 : index
    %c0_25 = arith.constant 0 : index
    %64 = vector.load %arg4[%c0_24, %c0_25] : memref<32x128xbf16, #tpu.memory_space<vmem>>, vector<32x128xbf16>
    %cst_26 = arith.constant dense<0.000000e+00> : vector<8x128xf32>
    %65 = tpu.matmul %63, %64, %cst_26 {dimension_numbers = #tpu.dot_dimension_numbers<[1], [0], [0], [1], [0, 0, 1, 1], [], []>} : vector<8x32xbf16>, vector<32x128xbf16>, vector<8x128xf32> -> vector<8x128xf32>
    %66 = arith.addf %62, %65 : vector<8x128xf32>
    %67 = vector.extract_strided_slice %66 {offsets = [0, 0], sizes = [8, 96], strides = [1, 1]} : vector<8x128xf32> to vector<8x96xf32>
    %68 = arith.negf %67 : vector<8x96xf32>
    %69 = math.exp %68 : vector<8x96xf32>
    %cst_27 = arith.constant 1.000000e+00 : f32
    %70 = vector.broadcast %cst_27 : f32 to vector<8x96xf32>
    %71 = arith.addf %70, %69 : vector<8x96xf32>
    %72 = arith.divf %70, %71 : vector<8x96xf32>
    %73 = vector.extract_strided_slice %66 {offsets = [0, 96], sizes = [8, 32], strides = [1, 1]} : vector<8x128xf32> to vector<8x32xf32>
    %74 = math.tanh %73 : vector<8x32xf32>
    %75 = vector.extract_strided_slice %72 {offsets = [0, 0], sizes = [8, 32], strides = [1, 1]} : vector<8x96xf32> to vector<8x32xf32>
    %76 = vector.extract_strided_slice %72 {offsets = [0, 32], sizes = [8, 32], strides = [1, 1]} : vector<8x96xf32> to vector<8x32xf32>
    %77 = vector.extract_strided_slice %72 {offsets = [0, 64], sizes = [8, 32], strides = [1, 1]} : vector<8x96xf32> to vector<8x32xf32>
    %78 = arith.mulf %76, %32 : vector<8x32xf32>
    %79 = arith.mulf %75, %74 : vector<8x32xf32>
    %80 = arith.addf %78, %79 : vector<8x32xf32>
    %81 = math.tanh %80 : vector<8x32xf32>
    %82 = arith.mulf %77, %81 : vector<8x32xf32>
    %c0_28 = arith.constant 0 : index
    %c0_29 = arith.constant 0 : index
    %83 = vector.load %arg6[%c0_28, %c0_29] : memref<32x128xbf16, #tpu.memory_space<vmem>>, vector<32x128xbf16>
    %c0_30 = arith.constant 0 : index
    %c0_31 = arith.constant 0 : index
    %84 = vector.load %arg7[%c0_30, %c0_31] : memref<32x128xbf16, #tpu.memory_space<vmem>>, vector<32x128xbf16>
    %85 = arith.truncf %82 : vector<8x32xf32> to vector<8x32xbf16>
    %cst_32 = arith.constant dense<0.000000e+00> : vector<8x128xf32>
    %86 = tpu.matmul %85, %83, %cst_32 {dimension_numbers = #tpu.dot_dimension_numbers<[1], [0], [0], [1], [0, 0, 1, 1], [], []>} : vector<8x32xbf16>, vector<32x128xbf16>, vector<8x128xf32> -> vector<8x128xf32>
    %87 = arith.truncf %58 : vector<8x32xf32> to vector<8x32xbf16>
    %cst_33 = arith.constant dense<0.000000e+00> : vector<8x128xf32>
    %88 = tpu.matmul %87, %84, %cst_33 {dimension_numbers = #tpu.dot_dimension_numbers<[1], [0], [0], [1], [0, 0, 1, 1], [], []>} : vector<8x32xbf16>, vector<32x128xbf16>, vector<8x128xf32> -> vector<8x128xf32>
    %89 = arith.addf %86, %88 : vector<8x128xf32>
    %90 = arith.addf %89, %9 : vector<8x128xf32>
    %91 = vector.extract_strided_slice %90 {offsets = [0, 0], sizes = [8, 96], strides = [1, 1]} : vector<8x128xf32> to vector<8x96xf32>
    %92 = arith.negf %91 : vector<8x96xf32>
    %93 = math.exp %92 : vector<8x96xf32>
    %cst_34 = arith.constant 1.000000e+00 : f32
    %94 = vector.broadcast %cst_34 : f32 to vector<8x96xf32>
    %95 = arith.addf %94, %93 : vector<8x96xf32>
    %96 = arith.divf %94, %95 : vector<8x96xf32>
    %97 = vector.extract_strided_slice %90 {offsets = [0, 96], sizes = [8, 32], strides = [1, 1]} : vector<8x128xf32> to vector<8x32xf32>
    %98 = math.tanh %97 : vector<8x32xf32>
    %99 = vector.extract_strided_slice %96 {offsets = [0, 0], sizes = [8, 32], strides = [1, 1]} : vector<8x96xf32> to vector<8x32xf32>
    %100 = vector.extract_strided_slice %96 {offsets = [0, 32], sizes = [8, 32], strides = [1, 1]} : vector<8x96xf32> to vector<8x32xf32>
    %101 = vector.extract_strided_slice %96 {offsets = [0, 64], sizes = [8, 32], strides = [1, 1]} : vector<8x96xf32> to vector<8x32xf32>
    %102 = arith.mulf %100, %56 : vector<8x32xf32>
    %103 = arith.mulf %99, %98 : vector<8x32xf32>
    %104 = arith.addf %102, %103 : vector<8x32xf32>
    %105 = math.tanh %104 : vector<8x32xf32>
    %106 = arith.mulf %101, %105 : vector<8x32xf32>
    %c2_i32 = arith.constant 2 : i32
    %c8_i32_35 = arith.constant 8 : i32
    %107 = arith.muli %c2_i32, %c8_i32_35 : i32
    %108 = tpu.assume_multiple %107, 8 : i32
    %109 = arith.index_cast %108 : i32 to index
    %c0_36 = arith.constant 0 : index
    %110 = vector.load %arg17[%109, %c0_36] : memref<64x128xf32, #tpu.memory_space<vmem>>, vector<8x128xf32>
    %111 = arith.truncf %82 : vector<8x32xf32> to vector<8x32xbf16>
    %c0_37 = arith.constant 0 : index
    %c0_38 = arith.constant 0 : index
    %112 = vector.load %arg4[%c0_37, %c0_38] : memref<32x128xbf16, #tpu.memory_space<vmem>>, vector<32x128xbf16>
    %cst_39 = arith.constant dense<0.000000e+00> : vector<8x128xf32>
    %113 = tpu.matmul %111, %112, %cst_39 {dimension_numbers = #tpu.dot_dimension_numbers<[1], [0], [0], [1], [0, 0, 1, 1], [], []>} : vector<8x32xbf16>, vector<32x128xbf16>, vector<8x128xf32> -> vector<8x128xf32>
    %114 = arith.addf %110, %113 : vector<8x128xf32>
    %115 = vector.extract_strided_slice %114 {offsets = [0, 0], sizes = [8, 96], strides = [1, 1]} : vector<8x128xf32> to vector<8x96xf32>
    %116 = arith.negf %115 : vector<8x96xf32>
    %117 = math.exp %116 : vector<8x96xf32>
    %cst_40 = arith.constant 1.000000e+00 : f32
    %118 = vector.broadcast %cst_40 : f32 to vector<8x96xf32>
    %119 = arith.addf %118, %117 : vector<8x96xf32>
    %120 = arith.divf %118, %119 : vector<8x96xf32>
    %121 = vector.extract_strided_slice %114 {offsets = [0, 96], sizes = [8, 32], strides = [1, 1]} : vector<8x128xf32> to vector<8x32xf32>
    %122 = math.tanh %121 : vector<8x32xf32>
    %123 = vector.extract_strided_slice %120 {offsets = [0, 0], sizes = [8, 32], strides = [1, 1]} : vector<8x96xf32> to vector<8x32xf32>
    %124 = vector.extract_strided_slice %120 {offsets = [0, 32], sizes = [8, 32], strides = [1, 1]} : vector<8x96xf32> to vector<8x32xf32>
    %125 = vector.extract_strided_slice %120 {offsets = [0, 64], sizes = [8, 32], strides = [1, 1]} : vector<8x96xf32> to vector<8x32xf32>
    %126 = arith.mulf %124, %80 : vector<8x32xf32>
    %127 = arith.mulf %123, %122 : vector<8x32xf32>
    %128 = arith.addf %126, %127 : vector<8x32xf32>
    %129 = math.tanh %128 : vector<8x32xf32>
    %130 = arith.mulf %125, %129 : vector<8x32xf32>
    %c0_41 = arith.constant 0 : index
    %c0_42 = arith.constant 0 : index
    %131 = vector.load %arg6[%c0_41, %c0_42] : memref<32x128xbf16, #tpu.memory_space<vmem>>, vector<32x128xbf16>
    %c0_43 = arith.constant 0 : index
    %c0_44 = arith.constant 0 : index
    %132 = vector.load %arg7[%c0_43, %c0_44] : memref<32x128xbf16, #tpu.memory_space<vmem>>, vector<32x128xbf16>
    %133 = arith.truncf %130 : vector<8x32xf32> to vector<8x32xbf16>
    %cst_45 = arith.constant dense<0.000000e+00> : vector<8x128xf32>
    %134 = tpu.matmul %133, %131, %cst_45 {dimension_numbers = #tpu.dot_dimension_numbers<[1], [0], [0], [1], [0, 0, 1, 1], [], []>} : vector<8x32xbf16>, vector<32x128xbf16>, vector<8x128xf32> -> vector<8x128xf32>
    %135 = arith.truncf %106 : vector<8x32xf32> to vector<8x32xbf16>
    %cst_46 = arith.constant dense<0.000000e+00> : vector<8x128xf32>
    %136 = tpu.matmul %135, %132, %cst_46 {dimension_numbers = #tpu.dot_dimension_numbers<[1], [0], [0], [1], [0, 0, 1, 1], [], []>} : vector<8x32xbf16>, vector<32x128xbf16>, vector<8x128xf32> -> vector<8x128xf32>
    %137 = arith.addf %134, %136 : vector<8x128xf32>
    %138 = arith.addf %137, %9 : vector<8x128xf32>
    %139 = vector.extract_strided_slice %138 {offsets = [0, 0], sizes = [8, 96], strides = [1, 1]} : vector<8x128xf32> to vector<8x96xf32>
    %140 = arith.negf %139 : vector<8x96xf32>
    %141 = math.exp %140 : vector<8x96xf32>
    %cst_47 = arith.constant 1.000000e+00 : f32
    %142 = vector.broadcast %cst_47 : f32 to vector<8x96xf32>
    %143 = arith.addf %142, %141 : vector<8x96xf32>
    %144 = arith.divf %142, %143 : vector<8x96xf32>
    %145 = vector.extract_strided_slice %138 {offsets = [0, 96], sizes = [8, 32], strides = [1, 1]} : vector<8x128xf32> to vector<8x32xf32>
    %146 = math.tanh %145 : vector<8x32xf32>
    %147 = vector.extract_strided_slice %144 {offsets = [0, 0], sizes = [8, 32], strides = [1, 1]} : vector<8x96xf32> to vector<8x32xf32>
    %148 = vector.extract_strided_slice %144 {offsets = [0, 32], sizes = [8, 32], strides = [1, 1]} : vector<8x96xf32> to vector<8x32xf32>
    %149 = vector.extract_strided_slice %144 {offsets = [0, 64], sizes = [8, 32], strides = [1, 1]} : vector<8x96xf32> to vector<8x32xf32>
    %150 = arith.mulf %148, %104 : vector<8x32xf32>
    %151 = arith.mulf %147, %146 : vector<8x32xf32>
    %152 = arith.addf %150, %151 : vector<8x32xf32>
    %153 = math.tanh %152 : vector<8x32xf32>
    %154 = arith.mulf %149, %153 : vector<8x32xf32>
    %c3_i32 = arith.constant 3 : i32
    %c8_i32_48 = arith.constant 8 : i32
    %155 = arith.muli %c3_i32, %c8_i32_48 : i32
    %156 = tpu.assume_multiple %155, 8 : i32
    %157 = arith.index_cast %156 : i32 to index
    %c0_49 = arith.constant 0 : index
    %158 = vector.load %arg17[%157, %c0_49] : memref<64x128xf32, #tpu.memory_space<vmem>>, vector<8x128xf32>
    %159 = arith.truncf %130 : vector<8x32xf32> to vector<8x32xbf16>
    %c0_50 = arith.constant 0 : index
    %c0_51 = arith.constant 0 : index
    %160 = vector.load %arg4[%c0_50, %c0_51] : memref<32x128xbf16, #tpu.memory_space<vmem>>, vector<32x128xbf16>
    %cst_52 = arith.constant dense<0.000000e+00> : vector<8x128xf32>
    %161 = tpu.matmul %159, %160, %cst_52 {dimension_numbers = #tpu.dot_dimension_numbers<[1], [0], [0], [1], [0, 0, 1, 1], [], []>} : vector<8x32xbf16>, vector<32x128xbf16>, vector<8x128xf32> -> vector<8x128xf32>
    %162 = arith.addf %158, %161 : vector<8x128xf32>
    %163 = vector.extract_strided_slice %162 {offsets = [0, 0], sizes = [8, 96], strides = [1, 1]} : vector<8x128xf32> to vector<8x96xf32>
    %164 = arith.negf %163 : vector<8x96xf32>
    %165 = math.exp %164 : vector<8x96xf32>
    %cst_53 = arith.constant 1.000000e+00 : f32
    %166 = vector.broadcast %cst_53 : f32 to vector<8x96xf32>
    %167 = arith.addf %166, %165 : vector<8x96xf32>
    %168 = arith.divf %166, %167 : vector<8x96xf32>
    %169 = vector.extract_strided_slice %162 {offsets = [0, 96], sizes = [8, 32], strides = [1, 1]} : vector<8x128xf32> to vector<8x32xf32>
    %170 = math.tanh %169 : vector<8x32xf32>
    %171 = vector.extract_strided_slice %168 {offsets = [0, 0], sizes = [8, 32], strides = [1, 1]} : vector<8x96xf32> to vector<8x32xf32>
    %172 = vector.extract_strided_slice %168 {offsets = [0, 32], sizes = [8, 32], strides = [1, 1]} : vector<8x96xf32> to vector<8x32xf32>
    %173 = vector.extract_strided_slice %168 {offsets = [0, 64], sizes = [8, 32], strides = [1, 1]} : vector<8x96xf32> to vector<8x32xf32>
    %174 = arith.mulf %172, %128 : vector<8x32xf32>
    %175 = arith.mulf %171, %170 : vector<8x32xf32>
    %176 = arith.addf %174, %175 : vector<8x32xf32>
    %177 = math.tanh %176 : vector<8x32xf32>
    %178 = arith.mulf %173, %177 : vector<8x32xf32>
    %c0_54 = arith.constant 0 : index
    %c0_55 = arith.constant 0 : index
    %179 = vector.load %arg6[%c0_54, %c0_55] : memref<32x128xbf16, #tpu.memory_space<vmem>>, vector<32x128xbf16>
    %c0_56 = arith.constant 0 : index
    %c0_57 = arith.constant 0 : index
    %180 = vector.load %arg7[%c0_56, %c0_57] : memref<32x128xbf16, #tpu.memory_space<vmem>>, vector<32x128xbf16>
    %181 = arith.truncf %178 : vector<8x32xf32> to vector<8x32xbf16>
    %cst_58 = arith.constant dense<0.000000e+00> : vector<8x128xf32>
    %182 = tpu.matmul %181, %179, %cst_58 {dimension_numbers = #tpu.dot_dimension_numbers<[1], [0], [0], [1], [0, 0, 1, 1], [], []>} : vector<8x32xbf16>, vector<32x128xbf16>, vector<8x128xf32> -> vector<8x128xf32>
    %183 = arith.truncf %154 : vector<8x32xf32> to vector<8x32xbf16>
    %cst_59 = arith.constant dense<0.000000e+00> : vector<8x128xf32>
    %184 = tpu.matmul %183, %180, %cst_59 {dimension_numbers = #tpu.dot_dimension_numbers<[1], [0], [0], [1], [0, 0, 1, 1], [], []>} : vector<8x32xbf16>, vector<32x128xbf16>, vector<8x128xf32> -> vector<8x128xf32>
    %185 = arith.addf %182, %184 : vector<8x128xf32>
    %186 = arith.addf %185, %9 : vector<8x128xf32>
    %187 = vector.extract_strided_slice %186 {offsets = [0, 0], sizes = [8, 96], strides = [1, 1]} : vector<8x128xf32> to vector<8x96xf32>
    %188 = arith.negf %187 : vector<8x96xf32>
    %189 = math.exp %188 : vector<8x96xf32>
    %cst_60 = arith.constant 1.000000e+00 : f32
    %190 = vector.broadcast %cst_60 : f32 to vector<8x96xf32>
    %191 = arith.addf %190, %189 : vector<8x96xf32>
    %192 = arith.divf %190, %191 : vector<8x96xf32>
    %193 = vector.extract_strided_slice %186 {offsets = [0, 96], sizes = [8, 32], strides = [1, 1]} : vector<8x128xf32> to vector<8x32xf32>
    %194 = math.tanh %193 : vector<8x32xf32>
    %195 = vector.extract_strided_slice %192 {offsets = [0, 0], sizes = [8, 32], strides = [1, 1]} : vector<8x96xf32> to vector<8x32xf32>
    %196 = vector.extract_strided_slice %192 {offsets = [0, 32], sizes = [8, 32], strides = [1, 1]} : vector<8x96xf32> to vector<8x32xf32>
    %197 = vector.extract_strided_slice %192 {offsets = [0, 64], sizes = [8, 32], strides = [1, 1]} : vector<8x96xf32> to vector<8x32xf32>
    %198 = arith.mulf %196, %152 : vector<8x32xf32>
    %199 = arith.mulf %195, %194 : vector<8x32xf32>
    %200 = arith.addf %198, %199 : vector<8x32xf32>
    %201 = math.tanh %200 : vector<8x32xf32>
    %202 = arith.mulf %197, %201 : vector<8x32xf32>
    %c4_i32 = arith.constant 4 : i32
    %c8_i32_61 = arith.constant 8 : i32
    %203 = arith.muli %c4_i32, %c8_i32_61 : i32
    %204 = tpu.assume_multiple %203, 8 : i32
    %205 = arith.index_cast %204 : i32 to index
    %c0_62 = arith.constant 0 : index
    %206 = vector.load %arg17[%205, %c0_62] : memref<64x128xf32, #tpu.memory_space<vmem>>, vector<8x128xf32>
    %207 = arith.truncf %178 : vector<8x32xf32> to vector<8x32xbf16>
    %c0_63 = arith.constant 0 : index
    %c0_64 = arith.constant 0 : index
    %208 = vector.load %arg4[%c0_63, %c0_64] : memref<32x128xbf16, #tpu.memory_space<vmem>>, vector<32x128xbf16>
    %cst_65 = arith.constant dense<0.000000e+00> : vector<8x128xf32>
    %209 = tpu.matmul %207, %208, %cst_65 {dimension_numbers = #tpu.dot_dimension_numbers<[1], [0], [0], [1], [0, 0, 1, 1], [], []>} : vector<8x32xbf16>, vector<32x128xbf16>, vector<8x128xf32> -> vector<8x128xf32>
    %210 = arith.addf %206, %209 : vector<8x128xf32>
    %211 = vector.extract_strided_slice %210 {offsets = [0, 0], sizes = [8, 96], strides = [1, 1]} : vector<8x128xf32> to vector<8x96xf32>
    %212 = arith.negf %211 : vector<8x96xf32>
    %213 = math.exp %212 : vector<8x96xf32>
    %cst_66 = arith.constant 1.000000e+00 : f32
    %214 = vector.broadcast %cst_66 : f32 to vector<8x96xf32>
    %215 = arith.addf %214, %213 : vector<8x96xf32>
    %216 = arith.divf %214, %215 : vector<8x96xf32>
    %217 = vector.extract_strided_slice %210 {offsets = [0, 96], sizes = [8, 32], strides = [1, 1]} : vector<8x128xf32> to vector<8x32xf32>
    %218 = math.tanh %217 : vector<8x32xf32>
    %219 = vector.extract_strided_slice %216 {offsets = [0, 0], sizes = [8, 32], strides = [1, 1]} : vector<8x96xf32> to vector<8x32xf32>
    %220 = vector.extract_strided_slice %216 {offsets = [0, 32], sizes = [8, 32], strides = [1, 1]} : vector<8x96xf32> to vector<8x32xf32>
    %221 = vector.extract_strided_slice %216 {offsets = [0, 64], sizes = [8, 32], strides = [1, 1]} : vector<8x96xf32> to vector<8x32xf32>
    %222 = arith.mulf %220, %176 : vector<8x32xf32>
    %223 = arith.mulf %219, %218 : vector<8x32xf32>
    %224 = arith.addf %222, %223 : vector<8x32xf32>
    %225 = math.tanh %224 : vector<8x32xf32>
    %226 = arith.mulf %221, %225 : vector<8x32xf32>
    %c0_67 = arith.constant 0 : index
    %c0_68 = arith.constant 0 : index
    %227 = vector.load %arg6[%c0_67, %c0_68] : memref<32x128xbf16, #tpu.memory_space<vmem>>, vector<32x128xbf16>
    %c0_69 = arith.constant 0 : index
    %c0_70 = arith.constant 0 : index
    %228 = vector.load %arg7[%c0_69, %c0_70] : memref<32x128xbf16, #tpu.memory_space<vmem>>, vector<32x128xbf16>
    %229 = arith.truncf %226 : vector<8x32xf32> to vector<8x32xbf16>
    %cst_71 = arith.constant dense<0.000000e+00> : vector<8x128xf32>
    %230 = tpu.matmul %229, %227, %cst_71 {dimension_numbers = #tpu.dot_dimension_numbers<[1], [0], [0], [1], [0, 0, 1, 1], [], []>} : vector<8x32xbf16>, vector<32x128xbf16>, vector<8x128xf32> -> vector<8x128xf32>
    %231 = arith.truncf %202 : vector<8x32xf32> to vector<8x32xbf16>
    %cst_72 = arith.constant dense<0.000000e+00> : vector<8x128xf32>
    %232 = tpu.matmul %231, %228, %cst_72 {dimension_numbers = #tpu.dot_dimension_numbers<[1], [0], [0], [1], [0, 0, 1, 1], [], []>} : vector<8x32xbf16>, vector<32x128xbf16>, vector<8x128xf32> -> vector<8x128xf32>
    %233 = arith.addf %230, %232 : vector<8x128xf32>
    %234 = arith.addf %233, %9 : vector<8x128xf32>
    %235 = vector.extract_strided_slice %234 {offsets = [0, 0], sizes = [8, 96], strides = [1, 1]} : vector<8x128xf32> to vector<8x96xf32>
    %236 = arith.negf %235 : vector<8x96xf32>
    %237 = math.exp %236 : vector<8x96xf32>
    %cst_73 = arith.constant 1.000000e+00 : f32
    %238 = vector.broadcast %cst_73 : f32 to vector<8x96xf32>
    %239 = arith.addf %238, %237 : vector<8x96xf32>
    %240 = arith.divf %238, %239 : vector<8x96xf32>
    %241 = vector.extract_strided_slice %234 {offsets = [0, 96], sizes = [8, 32], strides = [1, 1]} : vector<8x128xf32> to vector<8x32xf32>
    %242 = math.tanh %241 : vector<8x32xf32>
    %243 = vector.extract_strided_slice %240 {offsets = [0, 0], sizes = [8, 32], strides = [1, 1]} : vector<8x96xf32> to vector<8x32xf32>
    %244 = vector.extract_strided_slice %240 {offsets = [0, 32], sizes = [8, 32], strides = [1, 1]} : vector<8x96xf32> to vector<8x32xf32>
    %245 = vector.extract_strided_slice %240 {offsets = [0, 64], sizes = [8, 32], strides = [1, 1]} : vector<8x96xf32> to vector<8x32xf32>
    %246 = arith.mulf %244, %200 : vector<8x32xf32>
    %247 = arith.mulf %243, %242 : vector<8x32xf32>
    %248 = arith.addf %246, %247 : vector<8x32xf32>
    %249 = math.tanh %248 : vector<8x32xf32>
    %250 = arith.mulf %245, %249 : vector<8x32xf32>
    %c5_i32 = arith.constant 5 : i32
    %c8_i32_74 = arith.constant 8 : i32
    %251 = arith.muli %c5_i32, %c8_i32_74 : i32
    %252 = tpu.assume_multiple %251, 8 : i32
    %253 = arith.index_cast %252 : i32 to index
    %c0_75 = arith.constant 0 : index
    %254 = vector.load %arg17[%253, %c0_75] : memref<64x128xf32, #tpu.memory_space<vmem>>, vector<8x128xf32>
    %255 = arith.truncf %226 : vector<8x32xf32> to vector<8x32xbf16>
    %c0_76 = arith.constant 0 : index
    %c0_77 = arith.constant 0 : index
    %256 = vector.load %arg4[%c0_76, %c0_77] : memref<32x128xbf16, #tpu.memory_space<vmem>>, vector<32x128xbf16>
    %cst_78 = arith.constant dense<0.000000e+00> : vector<8x128xf32>
    %257 = tpu.matmul %255, %256, %cst_78 {dimension_numbers = #tpu.dot_dimension_numbers<[1], [0], [0], [1], [0, 0, 1, 1], [], []>} : vector<8x32xbf16>, vector<32x128xbf16>, vector<8x128xf32> -> vector<8x128xf32>
    %258 = arith.addf %254, %257 : vector<8x128xf32>
    %259 = vector.extract_strided_slice %258 {offsets = [0, 0], sizes = [8, 96], strides = [1, 1]} : vector<8x128xf32> to vector<8x96xf32>
    %260 = arith.negf %259 : vector<8x96xf32>
    %261 = math.exp %260 : vector<8x96xf32>
    %cst_79 = arith.constant 1.000000e+00 : f32
    %262 = vector.broadcast %cst_79 : f32 to vector<8x96xf32>
    %263 = arith.addf %262, %261 : vector<8x96xf32>
    %264 = arith.divf %262, %263 : vector<8x96xf32>
    %265 = vector.extract_strided_slice %258 {offsets = [0, 96], sizes = [8, 32], strides = [1, 1]} : vector<8x128xf32> to vector<8x32xf32>
    %266 = math.tanh %265 : vector<8x32xf32>
    %267 = vector.extract_strided_slice %264 {offsets = [0, 0], sizes = [8, 32], strides = [1, 1]} : vector<8x96xf32> to vector<8x32xf32>
    %268 = vector.extract_strided_slice %264 {offsets = [0, 32], sizes = [8, 32], strides = [1, 1]} : vector<8x96xf32> to vector<8x32xf32>
    %269 = vector.extract_strided_slice %264 {offsets = [0, 64], sizes = [8, 32], strides = [1, 1]} : vector<8x96xf32> to vector<8x32xf32>
    %270 = arith.mulf %268, %224 : vector<8x32xf32>
    %271 = arith.mulf %267, %266 : vector<8x32xf32>
    %272 = arith.addf %270, %271 : vector<8x32xf32>
    %273 = math.tanh %272 : vector<8x32xf32>
    %274 = arith.mulf %269, %273 : vector<8x32xf32>
    %c0_80 = arith.constant 0 : index
    %c0_81 = arith.constant 0 : index
    %275 = vector.load %arg6[%c0_80, %c0_81] : memref<32x128xbf16, #tpu.memory_space<vmem>>, vector<32x128xbf16>
    %c0_82 = arith.constant 0 : index
    %c0_83 = arith.constant 0 : index
    %276 = vector.load %arg7[%c0_82, %c0_83] : memref<32x128xbf16, #tpu.memory_space<vmem>>, vector<32x128xbf16>
    %277 = arith.truncf %274 : vector<8x32xf32> to vector<8x32xbf16>
    %cst_84 = arith.constant dense<0.000000e+00> : vector<8x128xf32>
    %278 = tpu.matmul %277, %275, %cst_84 {dimension_numbers = #tpu.dot_dimension_numbers<[1], [0], [0], [1], [0, 0, 1, 1], [], []>} : vector<8x32xbf16>, vector<32x128xbf16>, vector<8x128xf32> -> vector<8x128xf32>
    %279 = arith.truncf %250 : vector<8x32xf32> to vector<8x32xbf16>
    %cst_85 = arith.constant dense<0.000000e+00> : vector<8x128xf32>
    %280 = tpu.matmul %279, %276, %cst_85 {dimension_numbers = #tpu.dot_dimension_numbers<[1], [0], [0], [1], [0, 0, 1, 1], [], []>} : vector<8x32xbf16>, vector<32x128xbf16>, vector<8x128xf32> -> vector<8x128xf32>
    %281 = arith.addf %278, %280 : vector<8x128xf32>
    %282 = arith.addf %281, %9 : vector<8x128xf32>
    %283 = vector.extract_strided_slice %282 {offsets = [0, 0], sizes = [8, 96], strides = [1, 1]} : vector<8x128xf32> to vector<8x96xf32>
    %284 = arith.negf %283 : vector<8x96xf32>
    %285 = math.exp %284 : vector<8x96xf32>
    %cst_86 = arith.constant 1.000000e+00 : f32
    %286 = vector.broadcast %cst_86 : f32 to vector<8x96xf32>
    %287 = arith.addf %286, %285 : vector<8x96xf32>
    %288 = arith.divf %286, %287 : vector<8x96xf32>
    %289 = vector.extract_strided_slice %282 {offsets = [0, 96], sizes = [8, 32], strides = [1, 1]} : vector<8x128xf32> to vector<8x32xf32>
    %290 = math.tanh %289 : vector<8x32xf32>
    %291 = vector.extract_strided_slice %288 {offsets = [0, 0], sizes = [8, 32], strides = [1, 1]} : vector<8x96xf32> to vector<8x32xf32>
    %292 = vector.extract_strided_slice %288 {offsets = [0, 32], sizes = [8, 32], strides = [1, 1]} : vector<8x96xf32> to vector<8x32xf32>
    %293 = vector.extract_strided_slice %288 {offsets = [0, 64], sizes = [8, 32], strides = [1, 1]} : vector<8x96xf32> to vector<8x32xf32>
    %294 = arith.mulf %292, %248 : vector<8x32xf32>
    %295 = arith.mulf %291, %290 : vector<8x32xf32>
    %296 = arith.addf %294, %295 : vector<8x32xf32>
    %297 = math.tanh %296 : vector<8x32xf32>
    %298 = arith.mulf %293, %297 : vector<8x32xf32>
    %c6_i32 = arith.constant 6 : i32
    %c8_i32_87 = arith.constant 8 : i32
    %299 = arith.muli %c6_i32, %c8_i32_87 : i32
    %300 = tpu.assume_multiple %299, 8 : i32
    %301 = arith.index_cast %300 : i32 to index
    %c0_88 = arith.constant 0 : index
    %302 = vector.load %arg17[%301, %c0_88] : memref<64x128xf32, #tpu.memory_space<vmem>>, vector<8x128xf32>
    %303 = arith.truncf %274 : vector<8x32xf32> to vector<8x32xbf16>
    %c0_89 = arith.constant 0 : index
    %c0_90 = arith.constant 0 : index
    %304 = vector.load %arg4[%c0_89, %c0_90] : memref<32x128xbf16, #tpu.memory_space<vmem>>, vector<32x128xbf16>
    %cst_91 = arith.constant dense<0.000000e+00> : vector<8x128xf32>
    %305 = tpu.matmul %303, %304, %cst_91 {dimension_numbers = #tpu.dot_dimension_numbers<[1], [0], [0], [1], [0, 0, 1, 1], [], []>} : vector<8x32xbf16>, vector<32x128xbf16>, vector<8x128xf32> -> vector<8x128xf32>
    %306 = arith.addf %302, %305 : vector<8x128xf32>
    %307 = vector.extract_strided_slice %306 {offsets = [0, 0], sizes = [8, 96], strides = [1, 1]} : vector<8x128xf32> to vector<8x96xf32>
    %308 = arith.negf %307 : vector<8x96xf32>
    %309 = math.exp %308 : vector<8x96xf32>
    %cst_92 = arith.constant 1.000000e+00 : f32
    %310 = vector.broadcast %cst_92 : f32 to vector<8x96xf32>
    %311 = arith.addf %310, %309 : vector<8x96xf32>
    %312 = arith.divf %310, %311 : vector<8x96xf32>
    %313 = vector.extract_strided_slice %306 {offsets = [0, 96], sizes = [8, 32], strides = [1, 1]} : vector<8x128xf32> to vector<8x32xf32>
    %314 = math.tanh %313 : vector<8x32xf32>
    %315 = vector.extract_strided_slice %312 {offsets = [0, 0], sizes = [8, 32], strides = [1, 1]} : vector<8x96xf32> to vector<8x32xf32>
    %316 = vector.extract_strided_slice %312 {offsets = [0, 32], sizes = [8, 32], strides = [1, 1]} : vector<8x96xf32> to vector<8x32xf32>
    %317 = vector.extract_strided_slice %312 {offsets = [0, 64], sizes = [8, 32], strides = [1, 1]} : vector<8x96xf32> to vector<8x32xf32>
    %318 = arith.mulf %316, %272 : vector<8x32xf32>
    %319 = arith.mulf %315, %314 : vector<8x32xf32>
    %320 = arith.addf %318, %319 : vector<8x32xf32>
    %321 = math.tanh %320 : vector<8x32xf32>
    %322 = arith.mulf %317, %321 : vector<8x32xf32>
    %c0_93 = arith.constant 0 : index
    %c0_94 = arith.constant 0 : index
    %323 = vector.load %arg6[%c0_93, %c0_94] : memref<32x128xbf16, #tpu.memory_space<vmem>>, vector<32x128xbf16>
    %c0_95 = arith.constant 0 : index
    %c0_96 = arith.constant 0 : index
    %324 = vector.load %arg7[%c0_95, %c0_96] : memref<32x128xbf16, #tpu.memory_space<vmem>>, vector<32x128xbf16>
    %325 = arith.truncf %322 : vector<8x32xf32> to vector<8x32xbf16>
    %cst_97 = arith.constant dense<0.000000e+00> : vector<8x128xf32>
    %326 = tpu.matmul %325, %323, %cst_97 {dimension_numbers = #tpu.dot_dimension_numbers<[1], [0], [0], [1], [0, 0, 1, 1], [], []>} : vector<8x32xbf16>, vector<32x128xbf16>, vector<8x128xf32> -> vector<8x128xf32>
    %327 = arith.truncf %298 : vector<8x32xf32> to vector<8x32xbf16>
    %cst_98 = arith.constant dense<0.000000e+00> : vector<8x128xf32>
    %328 = tpu.matmul %327, %324, %cst_98 {dimension_numbers = #tpu.dot_dimension_numbers<[1], [0], [0], [1], [0, 0, 1, 1], [], []>} : vector<8x32xbf16>, vector<32x128xbf16>, vector<8x128xf32> -> vector<8x128xf32>
    %329 = arith.addf %326, %328 : vector<8x128xf32>
    %330 = arith.addf %329, %9 : vector<8x128xf32>
    %331 = vector.extract_strided_slice %330 {offsets = [0, 0], sizes = [8, 96], strides = [1, 1]} : vector<8x128xf32> to vector<8x96xf32>
    %332 = arith.negf %331 : vector<8x96xf32>
    %333 = math.exp %332 : vector<8x96xf32>
    %cst_99 = arith.constant 1.000000e+00 : f32
    %334 = vector.broadcast %cst_99 : f32 to vector<8x96xf32>
    %335 = arith.addf %334, %333 : vector<8x96xf32>
    %336 = arith.divf %334, %335 : vector<8x96xf32>
    %337 = vector.extract_strided_slice %330 {offsets = [0, 96], sizes = [8, 32], strides = [1, 1]} : vector<8x128xf32> to vector<8x32xf32>
    %338 = math.tanh %337 : vector<8x32xf32>
    %339 = vector.extract_strided_slice %336 {offsets = [0, 0], sizes = [8, 32], strides = [1, 1]} : vector<8x96xf32> to vector<8x32xf32>
    %340 = vector.extract_strided_slice %336 {offsets = [0, 32], sizes = [8, 32], strides = [1, 1]} : vector<8x96xf32> to vector<8x32xf32>
    %341 = vector.extract_strided_slice %336 {offsets = [0, 64], sizes = [8, 32], strides = [1, 1]} : vector<8x96xf32> to vector<8x32xf32>
    %342 = arith.mulf %340, %296 : vector<8x32xf32>
    %343 = arith.mulf %339, %338 : vector<8x32xf32>
    %344 = arith.addf %342, %343 : vector<8x32xf32>
    %345 = math.tanh %344 : vector<8x32xf32>
    %346 = arith.mulf %341, %345 : vector<8x32xf32>
    %c7_i32 = arith.constant 7 : i32
    %c8_i32_100 = arith.constant 8 : i32
    %347 = arith.muli %c7_i32, %c8_i32_100 : i32
    %348 = tpu.assume_multiple %347, 8 : i32
    %349 = arith.index_cast %348 : i32 to index
    %c0_101 = arith.constant 0 : index
    %350 = vector.load %arg17[%349, %c0_101] : memref<64x128xf32, #tpu.memory_space<vmem>>, vector<8x128xf32>
    %351 = arith.truncf %322 : vector<8x32xf32> to vector<8x32xbf16>
    %c0_102 = arith.constant 0 : index
    %c0_103 = arith.constant 0 : index
    %352 = vector.load %arg4[%c0_102, %c0_103] : memref<32x128xbf16, #tpu.memory_space<vmem>>, vector<32x128xbf16>
    %cst_104 = arith.constant dense<0.000000e+00> : vector<8x128xf32>
    %353 = tpu.matmul %351, %352, %cst_104 {dimension_numbers = #tpu.dot_dimension_numbers<[1], [0], [0], [1], [0, 0, 1, 1], [], []>} : vector<8x32xbf16>, vector<32x128xbf16>, vector<8x128xf32> -> vector<8x128xf32>
    %354 = arith.addf %350, %353 : vector<8x128xf32>
    %355 = vector.extract_strided_slice %354 {offsets = [0, 0], sizes = [8, 96], strides = [1, 1]} : vector<8x128xf32> to vector<8x96xf32>
    %356 = arith.negf %355 : vector<8x96xf32>
    %357 = math.exp %356 : vector<8x96xf32>
    %cst_105 = arith.constant 1.000000e+00 : f32
    %358 = vector.broadcast %cst_105 : f32 to vector<8x96xf32>
    %359 = arith.addf %358, %357 : vector<8x96xf32>
    %360 = arith.divf %358, %359 : vector<8x96xf32>
    %361 = vector.extract_strided_slice %354 {offsets = [0, 96], sizes = [8, 32], strides = [1, 1]} : vector<8x128xf32> to vector<8x32xf32>
    %362 = math.tanh %361 : vector<8x32xf32>
    %363 = vector.extract_strided_slice %360 {offsets = [0, 0], sizes = [8, 32], strides = [1, 1]} : vector<8x96xf32> to vector<8x32xf32>
    %364 = vector.extract_strided_slice %360 {offsets = [0, 32], sizes = [8, 32], strides = [1, 1]} : vector<8x96xf32> to vector<8x32xf32>
    %365 = vector.extract_strided_slice %360 {offsets = [0, 64], sizes = [8, 32], strides = [1, 1]} : vector<8x96xf32> to vector<8x32xf32>
    %366 = arith.mulf %364, %320 : vector<8x32xf32>
    %367 = arith.mulf %363, %362 : vector<8x32xf32>
    %368 = arith.addf %366, %367 : vector<8x32xf32>
    %369 = math.tanh %368 : vector<8x32xf32>
    %370 = arith.mulf %365, %369 : vector<8x32xf32>
    %c0_106 = arith.constant 0 : index
    %c0_107 = arith.constant 0 : index
    %371 = vector.load %arg6[%c0_106, %c0_107] : memref<32x128xbf16, #tpu.memory_space<vmem>>, vector<32x128xbf16>
    %c0_108 = arith.constant 0 : index
    %c0_109 = arith.constant 0 : index
    %372 = vector.load %arg7[%c0_108, %c0_109] : memref<32x128xbf16, #tpu.memory_space<vmem>>, vector<32x128xbf16>
    %373 = arith.truncf %370 : vector<8x32xf32> to vector<8x32xbf16>
    %cst_110 = arith.constant dense<0.000000e+00> : vector<8x128xf32>
    %374 = tpu.matmul %373, %371, %cst_110 {dimension_numbers = #tpu.dot_dimension_numbers<[1], [0], [0], [1], [0, 0, 1, 1], [], []>} : vector<8x32xbf16>, vector<32x128xbf16>, vector<8x128xf32> -> vector<8x128xf32>
    %375 = arith.truncf %346 : vector<8x32xf32> to vector<8x32xbf16>
    %cst_111 = arith.constant dense<0.000000e+00> : vector<8x128xf32>
    %376 = tpu.matmul %375, %372, %cst_111 {dimension_numbers = #tpu.dot_dimension_numbers<[1], [0], [0], [1], [0, 0, 1, 1], [], []>} : vector<8x32xbf16>, vector<32x128xbf16>, vector<8x128xf32> -> vector<8x128xf32>
    %377 = arith.addf %374, %376 : vector<8x128xf32>
    %378 = arith.addf %377, %9 : vector<8x128xf32>
    %379 = vector.extract_strided_slice %378 {offsets = [0, 0], sizes = [8, 96], strides = [1, 1]} : vector<8x128xf32> to vector<8x96xf32>
    %380 = arith.negf %379 : vector<8x96xf32>
    %381 = math.exp %380 : vector<8x96xf32>
    %cst_112 = arith.constant 1.000000e+00 : f32
    %382 = vector.broadcast %cst_112 : f32 to vector<8x96xf32>
    %383 = arith.addf %382, %381 : vector<8x96xf32>
    %384 = arith.divf %382, %383 : vector<8x96xf32>
    %385 = vector.extract_strided_slice %378 {offsets = [0, 96], sizes = [8, 32], strides = [1, 1]} : vector<8x128xf32> to vector<8x32xf32>
    %386 = math.tanh %385 : vector<8x32xf32>
    %387 = vector.extract_strided_slice %384 {offsets = [0, 0], sizes = [8, 32], strides = [1, 1]} : vector<8x96xf32> to vector<8x32xf32>
    %388 = vector.extract_strided_slice %384 {offsets = [0, 32], sizes = [8, 32], strides = [1, 1]} : vector<8x96xf32> to vector<8x32xf32>
    %389 = vector.extract_strided_slice %384 {offsets = [0, 64], sizes = [8, 32], strides = [1, 1]} : vector<8x96xf32> to vector<8x32xf32>
    %390 = arith.mulf %388, %344 : vector<8x32xf32>
    %391 = arith.mulf %387, %386 : vector<8x32xf32>
    %392 = arith.addf %390, %391 : vector<8x32xf32>
    %393 = math.tanh %392 : vector<8x32xf32>
    %394 = arith.mulf %389, %393 : vector<8x32xf32>
    %c8_i32_113 = arith.constant 8 : i32
    %395 = arith.truncf %394 : vector<8x32xf32> to vector<8x32xbf16>
    %c0_114 = arith.constant 0 : index
    %c0_115 = arith.constant 0 : index
    %396 = vector.load %arg9[%c0_114, %c0_115] : memref<32x64xbf16, #tpu.memory_space<vmem>>, vector<32x64xbf16>
    %cst_116 = arith.constant dense<0.000000e+00> : vector<8x64xf32>
    %397 = tpu.matmul %395, %396, %cst_116 {dimension_numbers = #tpu.dot_dimension_numbers<[1], [0], [0], [1], [0, 0, 1, 1], [], []>} : vector<8x32xbf16>, vector<32x64xbf16>, vector<8x64xf32> -> vector<8x64xf32>
    %c0_117 = arith.constant 0 : index
    %c0_118 = arith.constant 0 : index
    %398 = vector.load %arg2[%c0_117, %c0_118] : memref<8x8xbf16, #tpu.memory_space<vmem>>, vector<8x8xbf16>
    %c0_119 = arith.constant 0 : index
    %c0_120 = arith.constant 0 : index
    %399 = vector.load %arg10[%c0_119, %c0_120] : memref<8x64xbf16, #tpu.memory_space<vmem>>, vector<8x64xbf16>
    %cst_121 = arith.constant dense<0.000000e+00> : vector<8x64xf32>
    %400 = tpu.matmul %398, %399, %cst_121 {dimension_numbers = #tpu.dot_dimension_numbers<[1], [0], [0], [1], [0, 0, 1, 1], [], []>} : vector<8x8xbf16>, vector<8x64xbf16>, vector<8x64xf32> -> vector<8x64xf32>
    %401 = arith.addf %397, %400 : vector<8x64xf32>
    %c0_122 = arith.constant 0 : index
    %c0_123 = arith.constant 0 : index
    %402 = vector.load %arg11[%c0_122, %c0_123] : memref<1x64xf32, #tpu.memory_space<vmem>>, vector<1x64xf32>
    %403 = vector.broadcast %402 : vector<1x64xf32> to vector<8x64xf32>
    %404 = arith.addf %401, %403 : vector<8x64xf32>
    %cst_124 = arith.constant 0.000000e+00 : f32
    %405 = vector.broadcast %cst_124 : f32 to vector<8x64xf32>
    %406 = arith.maximumf %404, %405 : vector<8x64xf32>
    %407 = arith.truncf %406 : vector<8x64xf32> to vector<8x64xbf16>
    %c0_125 = arith.constant 0 : index
    %c0_126 = arith.constant 0 : index
    %408 = vector.load %arg12[%c0_125, %c0_126] : memref<64x64xbf16, #tpu.memory_space<vmem>>, vector<64x64xbf16>
    %cst_127 = arith.constant dense<0.000000e+00> : vector<8x64xf32>
    %409 = tpu.matmul %407, %408, %cst_127 {dimension_numbers = #tpu.dot_dimension_numbers<[1], [0], [0], [1], [0, 0, 1, 1], [], []>} : vector<8x64xbf16>, vector<64x64xbf16>, vector<8x64xf32> -> vector<8x64xf32>
    %c0_128 = arith.constant 0 : index
    %c0_129 = arith.constant 0 : index
    %410 = vector.load %arg13[%c0_128, %c0_129] : memref<1x64xf32, #tpu.memory_space<vmem>>, vector<1x64xf32>
    %411 = vector.broadcast %410 : vector<1x64xf32> to vector<8x64xf32>
    %412 = arith.addf %409, %411 : vector<8x64xf32>
    %cst_130 = arith.constant 0.000000e+00 : f32
    %413 = vector.broadcast %cst_130 : f32 to vector<8x64xf32>
    %414 = arith.maximumf %412, %413 : vector<8x64xf32>
    %415 = arith.truncf %414 : vector<8x64xf32> to vector<8x64xbf16>
    %c0_131 = arith.constant 0 : index
    %c0_132 = arith.constant 0 : index
    %416 = vector.load %arg14[%c0_131, %c0_132] : memref<64x128xbf16, #tpu.memory_space<vmem>>, vector<64x128xbf16>
    %cst_133 = arith.constant dense<0.000000e+00> : vector<8x128xf32>
    %417 = tpu.matmul %415, %416, %cst_133 {dimension_numbers = #tpu.dot_dimension_numbers<[1], [0], [0], [1], [0, 0, 1, 1], [], []>} : vector<8x64xbf16>, vector<64x128xbf16>, vector<8x128xf32> -> vector<8x128xf32>
    %c0_134 = arith.constant 0 : index
    %c0_135 = arith.constant 0 : index
    %418 = vector.load %arg15[%c0_134, %c0_135] : memref<1x128xf32, #tpu.memory_space<vmem>>, vector<1x128xf32>
    %419 = vector.broadcast %418 : vector<1x128xf32> to vector<8x128xf32>
    %420 = arith.addf %417, %419 : vector<8x128xf32>
    %c0_136 = arith.constant 0 : index
    %c0_137 = arith.constant 0 : index
    %421 = vector.load %arg16[%c0_136, %c0_137] : memref<8x128xf32, #tpu.memory_space<vmem>>, vector<8x128xf32>
    tpu.vector_store %arg16[%c0_136, %c0_137], %420 {strides = array<i32>} : memref<8x128xf32, #tpu.memory_space<vmem>>, vector<8x128xf32>,
    return
  }
  func.func @transform_0(%arg0: i32) -> (i32, i32) {
    %c0_i32 = arith.constant 0 : i32
    %c0_i32_0 = arith.constant 0 : i32
    return %arg0, %c0_i32 : i32, i32
  }
  func.func @transform_1(%arg0: i32) -> (i32, i32) {
    %c0_i32 = arith.constant 0 : i32
    %c0_i32_0 = arith.constant 0 : i32
    return %arg0, %c0_i32 : i32, i32
  }
  func.func @transform_2(%arg0: i32) -> (i32, i32) {
    %c0_i32 = arith.constant 0 : i32
    %c0_i32_0 = arith.constant 0 : i32
    %c0_i32_1 = arith.constant 0 : i32
    return %c0_i32, %c0_i32_0 : i32, i32
  }
  func.func @transform_3(%arg0: i32) -> (i32, i32) {
    %c0_i32 = arith.constant 0 : i32
    %c0_i32_0 = arith.constant 0 : i32
    %c0_i32_1 = arith.constant 0 : i32
    return %c0_i32, %c0_i32_0 : i32, i32
  }
  func.func @transform_4(%arg0: i32) -> (i32, i32) {
    %c0_i32 = arith.constant 0 : i32
    %c0_i32_0 = arith.constant 0 : i32
    %c0_i32_1 = arith.constant 0 : i32
    return %c0_i32, %c0_i32_0 : i32, i32
  }
  func.func @transform_5(%arg0: i32) -> (i32, i32) {
    %c0_i32 = arith.constant 0 : i32
    %c0_i32_0 = arith.constant 0 : i32
    %c0_i32_1 = arith.constant 0 : i32
    return %c0_i32, %c0_i32_0 : i32, i32
  }
  func.func @transform_6(%arg0: i32) -> (i32, i32) {
    %c0_i32 = arith.constant 0 : i32
    %c0_i32_0 = arith.constant 0 : i32
    %c0_i32_1 = arith.constant 0 : i32
    return %c0_i32, %c0_i32_0 : i32, i32
  }
  func.func @transform_7(%arg0: i32) -> (i32, i32) {
    %c0_i32 = arith.constant 0 : i32
    %c0_i32_0 = arith.constant 0 : i32
    %c0_i32_1 = arith.constant 0 : i32
    return %c0_i32, %c0_i32_0 : i32, i32
  }
  func.func @transform_8(%arg0: i32) -> (i32, i32) {
    %c0_i32 = arith.constant 0 : i32
    %c0_i32_0 = arith.constant 0 : i32
    %c0_i32_1 = arith.constant 0 : i32
    return %c0_i32, %c0_i32_0 : i32, i32
  }
  func.func @transform_9(%arg0: i32) -> (i32, i32) {
    %c0_i32 = arith.constant 0 : i32
    %c0_i32_0 = arith.constant 0 : i32
    %c0_i32_1 = arith.constant 0 : i32
    return %c0_i32, %c0_i32_0 : i32, i32
  }
  func.func @transform_10(%arg0: i32) -> (i32, i32) {
    %c0_i32 = arith.constant 0 : i32
    %c0_i32_0 = arith.constant 0 : i32
    %c0_i32_1 = arith.constant 0 : i32
    return %c0_i32, %c0_i32_0 : i32, i32
  }
  func.func @transform_11(%arg0: i32) -> (i32, i32) {
    %c0_i32 = arith.constant 0 : i32
    %c0_i32_0 = arith.constant 0 : i32
    %c0_i32_1 = arith.constant 0 : i32
    return %c0_i32, %c0_i32_0 : i32, i32
  }
  func.func @transform_12(%arg0: i32) -> (i32, i32) {
    %c0_i32 = arith.constant 0 : i32
    %c0_i32_0 = arith.constant 0 : i32
    %c0_i32_1 = arith.constant 0 : i32
    return %c0_i32, %c0_i32_0 : i32, i32
  }
  func.func @transform_13(%arg0: i32) -> (i32, i32) {
    %c0_i32 = arith.constant 0 : i32
    %c0_i32_0 = arith.constant 0 : i32
    %c0_i32_1 = arith.constant 0 : i32
    return %c0_i32, %c0_i32_0 : i32, i32
  }
  func.func @transform_14(%arg0: i32) -> (i32, i32) {
    %c0_i32 = arith.constant 0 : i32
    %c0_i32_0 = arith.constant 0 : i32
    %c0_i32_1 = arith.constant 0 : i32
    return %c0_i32, %c0_i32_0 : i32, i32
  }
  func.func @transform_15(%arg0: i32) -> (i32, i32) {
    %c0_i32 = arith.constant 0 : i32
    %c0_i32_0 = arith.constant 0 : i32
    return %arg0, %c0_i32 : i32, i32
  }
}

</mosaic_0001>

<bundles_post_ra>
// kernel: tpu_custom_call.1
= control target key start
LH: loop header
LB: loop body
LE: loop exit
PB: predicated region body
PF: predicated region fallthrough
CT: control target
= control target key end

     0   :  { %s3455_s0 = inlined_call_operand.vmem [shape: bf16[64,16], index: 0, kind: input, shape index: {}]   ;;  %s3456_s1 = inlined_call_operand.hbm [shape: bf16[8,8], index: 1, kind: input, shape index: {}]   ;;  %s3457_s2 = inlined_call_operand.hbm [shape: bf16[16,128], index: 2, kind: input, shape index: {}]   ;;  %s3458_s3 = inlined_call_operand.hbm [shape: bf16[32,128], index: 3, kind: input, shape index: {}]   ;;  %s3459_s4 = inlined_call_operand.vmem [shape: f32[1,128], index: 4, kind: input, shape index: {}]   ;;  %s3460_s5 = inlined_call_operand.hbm [shape: bf16[32,128], index: 5, kind: input, shape index: {}]   ;;  %s3461_s6 = inlined_call_operand.hbm [shape: bf16[32,128], index: 6, kind: input, shape index: {}]   ;;  %s3462_s7 = inlined_call_operand.vmem [shape: f32[1,128], index: 7, kind: input, shape index: {}]   ;;  %s3463_s8 = inlined_call_operand.hbm [shape: bf16[32,64], index: 8, kind: input, shape index: {}]   ;;  %s3464_s9 = inlined_call_operand.vmem [shape: bf16[8,64], index: 9, kind: input, shape index: {}]   ;;  %s3465_s10 = inlined_call_operand.vmem [shape: f32[1,64], index: 10, kind: input, shape index: {}]   ;;  %s3466_s11 = inlined_call_operand.vmem [shape: bf16[64,64], index: 11, kind: input, shape index: {}]   ;;  %s3467_s12 = inlined_call_operand.vmem [shape: f32[1,64], index: 12, kind: input, shape index: {}]   ;;  %s3468_s13 = inlined_call_operand.vmem [shape: bf16[64,128], index: 13, kind: input, shape index: {}]   ;;  %s3469_s14 = inlined_call_operand.vmem [shape: f32[1,128], index: 14, kind: input, shape index: {}]   ;;  %s3470_s15 = inlined_call_operand.hbm [shape: f32[8,128], index: 15, kind: output, shape index: {}]  }
   0x1   :  { %3472 = sst [smem:[#allocation20_spill]] %s3470_s15 }
   0x2   :  { %20 = vsyncpa [#allocation4], 0 }
   0x3   :  { %21 = vsyncpa [#allocation7], 0 }
   0x4   :  { %22 = vsyncpa [#allocation10], 0 }
   0x5   :  { %23 = vsyncpa [#allocation13], 0 }
   0x6   :  { %24 = vsyncpa [#allocation5], 0  ;;  %s2847_s18 = smov [#allocation6]   ;;  %s2683_s22 = scalar_lea.hbm %s3457_s2, 128 }
   0x7   :  { %s42_s19 = sshll.u32 %s2847_s18, 4  ;;  %p2684_p0 = scmp.ne.s32.totalorder %s3457_s2, %s2683_s22  ;;  %s43_s19 = int_to_ptr.vmem [resolvable:$true] %s42_s19 }
   0x8   :  { %p2687_p1 = scmp.lt.u32.totalorder %s2683_s22, %s3457_s2 }
   0xa   :  { %p2689_p2 = pnand %p2687_p1, %p2684_p0 }
   0xc   :  { %2692 = shalt.err (!%p2689_p2)
}
   0xd   :  { %s2693_s27 = scalar_lea.vmem %s43_s19, 128  ;;  %p2698_p4 = scmp.lt.s32.totalorder %s43_s19, %s43_s19 }
   0xe   :  { %p2694_p3 = scmp.ne.s32.totalorder %s43_s19, %s2693_s27  ;;  %p2699_p5 = scmp.lt.s32.totalorder %s2693_s27, %s2693_s27 }
  0x10   :  { %p2700_p6 = por %p2699_p5, %p2698_p4 }
  0x12   :  { %p2701_p7 = pnand %p2700_p6, %p2694_p3 }
  0x14   :  { %2704 = shalt.err (!%p2701_p7)
}
  0x15   :  { %s2848_s28 = smov 64   ;;  %s2849_s29 = smov 4  }
  0x16   :  { %48 = dma.hbm_to_vmem [thread:$0]  %s3457_s2, 128, %s43_s19, [#allocation7], %s2848_s28, %s2848_s28, %s2849_s29  }
  0x17   :  { %s2850_s17 = smov [#allocation9]   ;;  %s2851_s20 = smov [#allocation3]  }
  0x18   :  { %s68_s18 = sshll.u32 %s2850_s17, 4  ;;  %s33_s21 = sshll.u32 %s2851_s20, 4  ;;  %s69_s18 = int_to_ptr.vmem [resolvable:$true] %s68_s18  ;;  %s34_s21 = int_to_ptr.vmem [resolvable:$true] %s33_s21 }
  0x19   :  { %s2705_s24 = scalar_lea.hbm %s3460_s5, 256 }
  0x1a   :  { %p2706_p8 = scmp.ne.s32.totalorder %s3460_s5, %s2705_s24  ;;  %p2709_p9 = scmp.lt.u32.totalorder %s2705_s24, %s3460_s5 }
  0x1c   :  { %p2711_p10 = pnand %p2709_p9, %p2706_p8 }
  0x1e   :  { %2714 = shalt.err (!%p2711_p10)
}
  0x1f   :  { %s2715_s2 = scalar_lea.vmem %s69_s18, 256  ;;  %p2720_p12 = scmp.lt.s32.totalorder %s69_s18, %s69_s18 }
  0x20   :  { %p2716_p11 = scmp.ne.s32.totalorder %s69_s18, %s2715_s2  ;;  %p2721_p13 = scmp.lt.s32.totalorder %s2715_s2, %s2715_s2 }
  0x22   :  { %p2722_p0 = por %p2721_p13, %p2720_p12 }
  0x24   :  { %p2723_p1 = pnand %p2722_p0, %p2716_p11 }
  0x26   :  { %2726 = shalt.err (!%p2723_p1)
}
  0x27   :  { %74 = dma.hbm_to_vmem [thread:$0]  %s3460_s5, 256, %s69_s18, [#allocation10], %s2848_s28, %s2848_s28, %s2849_s29  }
  0x28   :  { %s2727_s17 = scalar_lea.hbm %s3456_s1, 64 }
  0x29   :  { %p2728_p2 = scmp.ne.s32.totalorder %s3456_s1, %s2727_s17  ;;  %p2731_p3 = scmp.lt.u32.totalorder %s2727_s17, %s3456_s1 }
  0x2b   :  { %p2733_p4 = pnand %p2731_p3, %p2728_p2 }
  0x2d   :  { %2736 = shalt.err (!%p2733_p4)
}
  0x2e   :  { %s2737_s25 = scalar_lea.vmem %s34_s21, 64  ;;  %p2742_p6 = scmp.lt.s32.totalorder %s34_s21, %s34_s21 }
  0x2f   :  { %p2738_p5 = scmp.ne.s32.totalorder %s34_s21, %s2737_s25  ;;  %p2743_p7 = scmp.lt.s32.totalorder %s2737_s25, %s2737_s25 }
  0x31   :  { %p2744_p8 = por %p2743_p7, %p2742_p6 }
  0x33   :  { %p2745_p9 = pnand %p2744_p8, %p2738_p5 }
  0x35   :  { %2748 = shalt.err (!%p2745_p9)
}
  0x36   :  { %36 = dma.hbm_to_vmem [thread:$0]  %s3456_s1, 64, %s34_s21, [#allocation4]  }
  0x37   :  { %s2852_s26 = smov [#allocation8]   ;;  %s2853_s2 = smov [#allocation11]  }
  0x38   :  { %s54_s27 = sshll.u32 %s2852_s26, 4  ;;  %s80_s19 = sshll.u32 %s2853_s2, 4  ;;  %s55_s27 = int_to_ptr.vmem [resolvable:$true] %s54_s27  ;;  %s81_s19 = int_to_ptr.vmem [resolvable:$true] %s80_s19 }
  0x39   :  { %s2749_s15 = scalar_lea.hbm %s3458_s3, 256 }
  0x3a   :  { %p2750_p10 = scmp.ne.s32.totalorder %s3458_s3, %s2749_s15  ;;  %p2753_p11 = scmp.lt.u32.totalorder %s2749_s15, %s3458_s3 }
  0x3c   :  { %p2755_p12 = pnand %p2753_p11, %p2750_p10 }
  0x3e   :  { %2758 = shalt.err (!%p2755_p12)
}
  0x3f   :  { %s2759_s1 = scalar_lea.vmem %s55_s27, 256  ;;  %p2764_p0 = scmp.lt.s32.totalorder %s55_s27, %s55_s27 }
  0x40   :  { %p2760_p13 = scmp.ne.s32.totalorder %s55_s27, %s2759_s1  ;;  %p2765_p1 = scmp.lt.s32.totalorder %s2759_s1, %s2759_s1 }
  0x42   :  { %p2766_p2 = por %p2765_p1, %p2764_p0 }
  0x44   :  { %p2767_p3 = pnand %p2766_p2, %p2760_p13 }
  0x46   :  { %2770 = shalt.err (!%p2767_p3)
}
  0x47   :  { %60 = dma.hbm_to_vmem [thread:$0]  %s3458_s3, 256, %s55_s27, [#allocation7], %s2848_s28, %s2848_s28, %s2849_s29  }
  0x48   :  { %s2771_s18 = scalar_lea.hbm %s3461_s6, 256 }
  0x49   :  { %p2772_p4 = scmp.ne.s32.totalorder %s3461_s6, %s2771_s18  ;;  %p2775_p5 = scmp.lt.u32.totalorder %s2771_s18, %s3461_s6 }
  0x4b   :  { %p2777_p6 = pnand %p2775_p5, %p2772_p4 }
  0x4d   :  { %2780 = shalt.err (!%p2777_p6)
}
  0x4e   :  { %s2781_s15 = scalar_lea.vmem %s81_s19, 256  ;;  %p2786_p8 = scmp.lt.s32.totalorder %s81_s19, %s81_s19 }
  0x4f   :  { %p2782_p7 = scmp.ne.s32.totalorder %s81_s19, %s2781_s15  ;;  %p2787_p9 = scmp.lt.s32.totalorder %s2781_s15, %s2781_s15 }
  0x51   :  { %p2788_p10 = por %p2787_p9, %p2786_p8 }
  0x53   :  { %p2789_p11 = pnand %p2788_p10, %p2782_p7 }
  0x55   :  { %2792 = shalt.err (!%p2789_p11)
}
  0x56   :  { %86 = dma.hbm_to_vmem [thread:$0]  %s3461_s6, 256, %s81_s19, [#allocation10], %s2848_s28, %s2848_s28, %s2849_s29  }
  0x57   :  { %s2854_s17 = smov [#allocation12]   ;;  %s2793_s1 = scalar_lea.hbm %s3463_s8, 256 }
  0x58   :  { %s94_s20 = sshll.u32 %s2854_s17, 4  ;;  %p2794_p12 = scmp.ne.s32.totalorder %s3463_s8, %s2793_s1  ;;  %s95_s20 = int_to_ptr.vmem [resolvable:$true] %s94_s20 }
  0x59   :  { %p2797_p13 = scmp.lt.u32.totalorder %s2793_s1, %s3463_s8 }
  0x5b   :  { %p2799_p0 = pnand %p2797_p13, %p2794_p12 }
  0x5d   :  { %2802 = shalt.err (!%p2799_p0)
}
  0x5e   :  { %s2803_s18 = scalar_lea.vmem %s95_s20, 256  ;;  %p2808_p2 = scmp.lt.s32.totalorder %s95_s20, %s95_s20 }
  0x5f   :  { %p2804_p1 = scmp.ne.s32.totalorder %s95_s20, %s2803_s18  ;;  %p2809_p3 = scmp.lt.s32.totalorder %s2803_s18, %s2803_s18 }
  0x61   :  { %p2810_p4 = por %p2809_p3, %p2808_p2 }
  0x63   :  { %p2811_p5 = pnand %p2810_p4, %p2804_p1 }
  0x65   :  { %2814 = shalt.err (!%p2811_p5)
}
  0x66   :  { %100 = dma.hbm_to_vmem [thread:$0]  %s3463_s8, 256, %s95_s20, [#allocation13], %s2848_s28, %s2848_s28, %s2849_s29  }
  0x67   :  { %2837 = dma.done.wait [#allocation4], 64  }
  0x68   :  { %2838 = vsyncadd [#allocation4], 4294967232 }
  0x69   :  { %2839 = dma.done.wait [#allocation7], 384  }
  0x6a   :  { %2840 = vsyncadd [#allocation7], 4294966912 }
  0x6b   :  { %2841 = dma.done.wait [#allocation10], 512  }
  0x6c   :  { %2842 = vsyncadd [#allocation10], 4294966784 }
  0x6d   :  { %2843 = dma.done.wait [#allocation13], 256  }
  0x6e   :  { %2844 = vsyncadd [#allocation13], 4294967040  ;;  %v2855_v0 = vmov 0.0   ;;  %vm2856_vm0 = vmmov 0   ;;  %v2526_v1 = vld [vmem:[#allocation6] sm:$0xff]   ;;  %v3030_v2 = vld [vmem:[#allocation8] sm:$0xff]  }
  0x6f   :  { %2283 = vmatprep.subr.bf16.mxu1 %v2855_v0  ;;  %2287 = vmatprep.mubr.msk.bf16.mxu1 %vm2856_vm0, %v2855_v0  ;;  %vm175_vm1 = vcmask 130048   ;;  %v2528_v3 = vld [vmem:[%s3455_s0] sm:$0xff]   ;;  %v2529_v4 = vld [vmem:[%s3455_s0 + $0x8] sm:$0xff]   ;;  %v3041_v5 = vld [vmem:[#allocation8 + $0x8] sm:$0xff]   ;;  %v2857_v6 = vmov 0   ;;  %s2858_s15 = smov 32  }
  0x70   :  { %2273 = vmatprep.subr.bf16.mxu0 %v2526_v1  ;;  %2284 = vmatpush3.bf16.msra.mxu1 %v3030_v2  ;;  %v3052_v7 = vld [vmem:[%s3459_s4] ss:$0 sm:$0xff]  ;;  %v3066_v28 = vld [vmem:[#allocation11] sm:$0xff]   ;;  %v2535_v31 = vld [vmem:[%s3455_s0 + $0x18] sm:$0xff]   ;;  %vm285_vm2 = vcmask 261120   ;;  %vm1811_vm3 = vcmask 1043456  }
  0x71   :  { %2274 = vmatpush3.bf16.msra.mxu0 %v2526_v1  ;;  %2275 = vmatprep.mubr.msk.bf16.mxu0 %vm175_vm1, %v2528_v3  ;;  %v3068_v29 = vld [vmem:[#allocation9] sm:$0xff]   ;;  %v2533_v30 = vld [vmem:[%s3455_s0 + $0x10] sm:$0xff]   ;;  %v3080_v33 = vld [vmem:[#allocation9 + $0x8] sm:$0xff]   ;;  %vm1807_vm4 = vcmask 64512   ;;  %vm1962_vm5 = vcmask 523264   ;;  %s2859_s23 = smov [#allocation14]  }
  0x72   :  { %2285 = vmatprep.subr.bf16.mxu1 %v2855_v0  ;;  %2299 = vmatprep.subr.bf16.mxu0 %v2855_v0  ;;  %v3078_v32 = vld [vmem:[#allocation11 + $0x8] sm:$0xff]   ;;  %v3127_v48 = vld [vmem:[%s3462_s7] ss:$0 sm:$0xff] }
  0x74   :  { %2276 = vmatmul.mubr.msk.bf16.vlgmr.msra.gmra.mrb[0].mxu0 %vm175_vm1, %v2529_v4  ;;  %2286 = vmatpush3.bf16.msra.mxu1 %v3041_v5 }
  0x75   :  { %2291 = vmatprep.subr.bf16.mxu1 %v2855_v0  ;;  %2300 = vmatpush3.bf16.msra.mxu0 %v3068_v29 }
  0x76   :  { %2279 = vmatprep.mubr.msk.bf16.mxu0 %vm175_vm1, %v2533_v30  ;;  %2301 = vmatprep.subr.bf16.mxu0 %v2855_v0 }
  0x77   :  { %2288 = vmatmul.mubr.bf16.vlgmr.msra.gmra.mrb[0].mxu1 %v2857_v6 }
  0x78   :  { %2295 = vmatprep.mubr.msk.bf16.mxu1 %vm2856_vm0, %v2855_v0  ;;  %2292 = vmatpush3.bf16.msra.mxu1 %v3066_v28 }
  0x79   :  { %2293 = vmatprep.subr.bf16.mxu1 %v2855_v0  ;;  %2302 = vmatpush3.bf16.msra.mxu0 %v3080_v33 }
  0x7a   :  { %2315 = vmatprep.subr.bf16.mxu0 %v2855_v0 }
  0x7c   :  { %2280 = vmatmul.mubr.msk.bf16.gmra.mrb[4].mxu0 %vm175_vm1, %v2535_v31  ;;  %2294 = vmatpush3.bf16.msra.mxu1 %v3078_v32 }
  0x7d   :  { %2303 = vmatprep.mubr.msk.bf16.mxu0 %vm2856_vm0, %v2855_v0  ;;  %2307 = vmatprep.subr.bf16.mxu1 %v2855_v0 }
  0x7f   :  { %2296 = vmatmul.mubr.bf16.vlgmr.msra.gmra.mrb[4].mxu1 %v2857_v6 }
  0x80   :  { %2308 = vmatpush3.bf16.msra.mxu1 %v3030_v2  ;;  %2311 = vmatprep.mubr.msk.bf16.mxu1 %vm2856_vm0, %v2855_v0 }
  0x81   :  { %2309 = vmatprep.subr.bf16.mxu1 %v2855_v0 }
  0x84   :  { %2310 = vmatpush3.bf16.msra.mxu1 %v3041_v5 }
  0x85   :  { %2323 = vmatprep.subr.bf16.mxu1 %v2855_v0 }
 0x147   :  { %v3054_v8 = vpop.f32.mrb[0].mxu0 }
 0x148   :  { %v222_v9 = vpop.f32.mrb[1].mxu0 }
 0x149   :  { %v223_v10 = vadd.f32 %v3052_v7, %v222_v9  ;;  %v3057_v11 = vpop.f32.mrb[2].mxu0 }
 0x14a   :  { %v3059_v12 = vpop.f32.mrb[3].mxu0  ;;  %v323_v13 = vpop.f32.mrb[0].mxu1 }
 0x14b   :  { %v329_v14 = vadd.f32 %v323_v13, %v223_v10  ;;  %v2289_v15 = vpop.f32.mrb[1].mxu1  ;;  %v226_v47 = vadd.f32 %v3052_v7, %v3059_v12 }
 0x14c   :  { %v326_v16 = vpop.f32.mrb[2].mxu1 }
 0x14d   :  { %2547 = vtanh.f32 %v329_v14  ;;  %v2290_v17 = vpop.f32.mrb[3].mxu1  ;;  %v2122_v19 = vmul.f32 -1.442695, %v329_v14 }
 0x14f   :  { %2549 = vpow2.f32 %v2122_v19  ;;  %v3100_v38 = vpop.f32.mrb[4].mxu0 }
 0x150   :  { %v3102_v39 = vpop.f32.mrb[5].mxu0 }
 0x151   :  { %v3104_v40 = vpop.f32.mrb[6].mxu0 }
 0x152   :  { %v3106_v41 = vpop.f32.mrb[7].mxu0  ;;  %v409_v42 = vpop.f32.mrb[4].mxu1 }
 0x153   :  { %v2297_v43 = vpop.f32.mrb[5].mxu1 }
 0x154   :  { %v412_v44 = vpop.f32.mrb[6].mxu1 }
 0x155   :  { %v2298_v45 = vpop.f32.mrb[7].mxu1 }
 0x157   :  { %v2548_v18 = vpop.eup %2547 }
 0x158   :  { %339 = vrot.lane.b32.xlu0 %v2548_v18, %s2858_s15 }
 0x159   :  { %v2550_v20 = vpop.eup %2549 }
 0x15a   :  { %v333_v21 = vadd.f32 1.0, %v2550_v20 }
 0x15c   :  { %2551 = vrcp.f32 %v333_v21 }
 0x166   :  { %v2552_v22 = vpop.eup %2551 }
 0x167   :  { %v337_v25 = vmul.f32 0.0, %v2552_v22 }
 0x1ca   :  { %v340_v23 = vpop.permute.xlu0 %339 }
 0x1cb   :  { %v342_v24 = vmul.f32 %v2552_v22, %v340_v23 }
 0x1cd   :  { %344 = vrot.lane.b32.xlu0 %v342_v24, %s2858_s15 }
 0x23f   :  { %v345_v26 = vpop.permute.xlu0 %344 }
 0x240   :  { %v3063_v27 = vadd.f32 %v345_v26, %v337_v25 }
 0x242   :  { %2553 = vtanh.f32 %v3063_v27 }
 0x24c   :  { %v2554_v34 = vpop.eup %2553 }
 0x24d   :  { %350 = vrot.lane.b32.xlu1 %v2554_v34, %s2858_s15 }
 0x2bf   :  { %v351_v35 = vpop.permute.xlu1 %350 }
 0x2c0   :  { %v353_v36 = vmul.f32 %v2552_v22, %v351_v35 }
 0x2c2   :  { %v362_v37 = vpack.c.bf16 %v353_v36, %v353_v36 }
 0x2c4   :  { %416 = vrot.lane.b32.xlu1 %v362_v37, %s2848_s28 }
 0x336   :  { %v417_v46 = vpop.permute.xlu1 %416 }
 0x337   :  { %2304 = vmatmul.mubr.msk.bf16.vlgmr.msra.gmra.mrb[8].mxu0 %vm285_vm2, %v417_v46  ;;  %2312 = vmatmul.mubr.msk.bf16.vlgmr.msra.gmra.mrb[8].mxu1 %vm285_vm2, %v417_v46 }
 0x338   :  { %2324 = vmatpush3.bf16.msra.mxu1 %v3068_v29  ;;  %2316 = vmatpush3.bf16.msra.mxu0 %v3066_v28 }
 0x339   :  { %2325 = vmatprep.subr.bf16.mxu1 %v2855_v0  ;;  %2317 = vmatprep.subr.bf16.mxu0 %v2855_v0 }
 0x33a   :  { %2327 = vmatprep.mubr.msk.bf16.mxu1 %vm2856_vm0, %v2855_v0  ;;  %2319 = vmatprep.mubr.msk.bf16.mxu0 %vm2856_vm0, %v2855_v0 }
 0x33c   :  { %2326 = vmatpush3.bf16.msra.mxu1 %v3080_v33  ;;  %2318 = vmatpush3.bf16.msra.mxu0 %v3078_v32 }
 0x33d   :  { %2331 = vmatprep.subr.bf16.mxu0 %v2855_v0  ;;  %2339 = vmatprep.subr.bf16.mxu1 %v2855_v0 }
 0x40a   :  { %v467_v49 = vpop.f32.mrb[8].mxu0  ;;  %v534_v50 = vpop.f32.mrb[8].mxu1 }
 0x40b   :  { %v468_v51 = vadd.f32 %v467_v49, %v409_v42  ;;  %v540_v52 = vadd.f32 %v534_v50, %v226_v47  ;;  %v2305_v53 = vpop.f32.mrb[9].mxu0  ;;  %v2313_v54 = vpop.f32.mrb[9].mxu1 }
 0x40c   :  { %v470_v55 = vpop.f32.mrb[10].mxu0  ;;  %v537_v56 = vpop.f32.mrb[10].mxu1 }
 0x40d   :  { %v473_v57 = vadd.f32 %v3127_v48, %v468_v51  ;;  %2555 = vtanh.f32 %v540_v52  ;;  %v2306_v58 = vpop.f32.mrb[11].mxu0  ;;  %v2314_v59 = vpop.f32.mrb[11].mxu1  ;;  %v2130_v62 = vmul.f32 -1.442695, %v540_v52  ;;  %v231_v51 = vadd.f32 %v3054_v8, %v3052_v7 }
 0x40f   :  { %2557 = vtanh.f32 %v473_v57  ;;  %v2128_v63 = vmul.f32 -1.442695, %v473_v57 }
 0x410   :  { %2559 = vpow2.f32 %v2130_v62 }
 0x411   :  { %2561 = vpow2.f32 %v2128_v63 }
 0x417   :  { %v2556_v60 = vpop.eup %2555 }
 0x418   :  { %550 = vrot.lane.b32.xlu1 %v2556_v60, %s2858_s15 }
 0x419   :  { %v2558_v61 = vpop.eup %2557 }
 0x41a   :  { %483 = vrot.lane.b32.xlu0 %v2558_v61, %s2858_s15  ;;  %v2560_v1 = vpop.eup %2559 }
 0x41b   :  { %v2562_v3 = vpop.eup %2561  ;;  %v544_v4 = vadd.f32 1.0, %v2560_v1 }
 0x41c   :  { %v477_v6 = vadd.f32 1.0, %v2562_v3 }
 0x41d   :  { %2563 = vrcp.f32 %v544_v4 }
 0x41e   :  { %2565 = vrcp.f32 %v477_v6 }
 0x427   :  { %v2564_v9 = vpop.eup %2563 }
 0x428   :  { %v2566_v13 = vpop.eup %2565  ;;  %v548_v16 = vmul.f32 %v2564_v9, %v3063_v27 }
 0x429   :  { %v481_v19 = vmul.f32 0.0, %v2566_v13 }
 0x48a   :  { %v551_v10 = vpop.permute.xlu1 %550 }
 0x48b   :  { %v553_v12 = vmul.f32 %v2564_v9, %v551_v10 }
 0x48c   :  { %v484_v14 = vpop.permute.xlu0 %483 }
 0x48d   :  { %v486_v15 = vmul.f32 %v2566_v13, %v484_v14  ;;  %555 = vrot.lane.b32.xlu1 %v553_v12, %s2858_s15 }
 0x48f   :  { %488 = vrot.lane.b32.xlu0 %v486_v15, %s2858_s15 }
 0x4ff   :  { %v556_v17 = vpop.permute.xlu1 %555 }
 0x500   :  { %v3135_v18 = vadd.f32 %v556_v17, %v548_v16 }
 0x501   :  { %v489_v20 = vpop.permute.xlu0 %488 }
 0x502   :  { %2567 = vtanh.f32 %v3135_v18  ;;  %v3138_v21 = vadd.f32 %v489_v20, %v481_v19 }
 0x504   :  { %2569 = vtanh.f32 %v3138_v21 }
 0x50c   :  { %v2568_v22 = vpop.eup %2567 }
 0x50d   :  { %561 = vrot.lane.b32.xlu1 %v2568_v22, %s2858_s15 }
 0x50e   :  { %v2570_v23 = vpop.eup %2569 }
 0x50f   :  { %494 = vrot.lane.b32.xlu0 %v2570_v23, %s2858_s15 }
 0x57f   :  { %v562_v24 = vpop.permute.xlu1 %561 }
 0x580   :  { %v564_v25 = vmul.f32 %v2564_v9, %v562_v24 }
 0x581   :  { %v495_v26 = vpop.permute.xlu0 %494 }
 0x582   :  { %v565_v27 = vpack.c.bf16 %v564_v25, %v564_v25  ;;  %v497_v30 = vmul.f32 %v2566_v13, %v495_v26 }
 0x584   :  { %v566_v31 = vpack.c.bf16 %v497_v30, %v497_v30  ;;  %614 = vrot.lane.b32.xlu1 %v565_v27, %s2848_s28 }
 0x586   :  { %568 = vrot.lane.b32.xlu0 %v566_v31, %s2848_s28 }
 0x5f6   :  { %v615_v34 = vpop.permute.xlu1 %614 }
 0x5f7   :  { %2328 = vmatmul.mubr.msk.bf16.vlgmr.msra.gmra.mrb[12].mxu1 %vm285_vm2, %v615_v34 }
 0x5f8   :  { %v569_v35 = vpop.permute.xlu0 %568  ;;  %2340 = vmatpush3.bf16.msra.mxu1 %v3066_v28  ;;  %2343 = vmatprep.mubr.msk.bf16.mxu1 %vm2856_vm0, %v2855_v0 }
 0x5f9   :  { %2320 = vmatmul.mubr.msk.bf16.vlgmr.msra.gmra.mrb[12].mxu0 %vm285_vm2, %v569_v35  ;;  %2341 = vmatprep.subr.bf16.mxu1 %v2855_v0 }
 0x5fa   :  { %2332 = vmatpush3.bf16.msra.mxu0 %v3030_v2  ;;  %2335 = vmatprep.mubr.msk.bf16.mxu0 %vm2856_vm0, %v2855_v0 }
 0x5fb   :  { %2333 = vmatprep.subr.bf16.mxu0 %v2855_v0 }
 0x5fc   :  { %2342 = vmatpush3.bf16.msra.mxu1 %v3078_v32 }
 0x5fd   :  { %2355 = vmatprep.subr.bf16.mxu1 %v2855_v0 }
 0x5fe   :  { %2334 = vmatpush3.bf16.msra.mxu0 %v3041_v5 }
 0x5ff   :  { %2347 = vmatprep.subr.bf16.mxu0 %v2855_v0 }
 0x601   :  { %2336 = vmatmul.mubr.msk.bf16.vlgmr.msra.gmra.mrb[16].mxu0 %vm285_vm2, %v615_v34 }
 0x602   :  { %2348 = vmatpush3.bf16.msra.mxu0 %v3068_v29  ;;  %2351 = vmatprep.mubr.msk.bf16.mxu0 %vm2856_vm0, %v2855_v0 }
 0x603   :  { %2349 = vmatprep.subr.bf16.mxu0 %v2855_v0 }
 0x606   :  { %2350 = vmatpush3.bf16.msra.mxu0 %v3080_v33 }
 0x607   :  { %2363 = vmatprep.subr.bf16.mxu0 %v2855_v0 }
 0x6ca   :  { %v653_v36 = vpop.f32.mrb[12].mxu1 }
 0x6cb   :  { %v2329_v37 = vpop.f32.mrb[13].mxu1 }
 0x6cc   :  { %v607_v42 = vpop.f32.mrb[12].mxu0  ;;  %v656_v43 = vpop.f32.mrb[14].mxu1  ;;  %v234_v37 = vadd.f32 %v3057_v11, %v3052_v7 }
 0x6cd   :  { %v654_v44 = vadd.f32 %v653_v36, %v607_v42  ;;  %v2321_v45 = vpop.f32.mrb[13].mxu0  ;;  %v2330_v46 = vpop.f32.mrb[15].mxu1 }
 0x6ce   :  { %v610_v47 = vpop.f32.mrb[14].mxu0 }
 0x6cf   :  { %v659_v49 = vadd.f32 %v3127_v48, %v654_v44  ;;  %v2322_v50 = vpop.f32.mrb[15].mxu0 }
 0x6d1   :  { %2571 = vtanh.f32 %v659_v49  ;;  %v2133_v59 = vmul.f32 -1.442695, %v659_v49 }
 0x6d4   :  { %v720_v52 = vpop.f32.mrb[16].mxu0 }
 0x6d5   :  { %v726_v53 = vadd.f32 %v720_v52, %v231_v51  ;;  %v2337_v54 = vpop.f32.mrb[17].mxu0 }
 0x6d6   :  { %v723_v55 = vpop.f32.mrb[18].mxu0 }
 0x6d7   :  { %2573 = vtanh.f32 %v726_v53  ;;  %v2338_v56 = vpop.f32.mrb[19].mxu0  ;;  %v2135_v60 = vmul.f32 -1.442695, %v726_v53 }
 0x6d8   :  { %2575 = vpow2.f32 %v2133_v59 }
 0x6d9   :  { %2577 = vpow2.f32 %v2135_v60 }
 0x6db   :  { %v2572_v57 = vpop.eup %2571 }
 0x6dc   :  { %669 = vrot.lane.b32.xlu0 %v2572_v57, %s2858_s15 }
 0x6e1   :  { %v2574_v58 = vpop.eup %2573 }
 0x6e2   :  { %736 = vrot.lane.b32.xlu1 %v2574_v58, %s2858_s15  ;;  %v2576_v61 = vpop.eup %2575 }
 0x6e3   :  { %v663_v62 = vadd.f32 1.0, %v2576_v61  ;;  %v2578_v63 = vpop.eup %2577 }
 0x6e4   :  { %v730_v8 = vadd.f32 1.0, %v2578_v63 }
 0x6e5   :  { %2579 = vrcp.f32 %v663_v62 }
 0x6e6   :  { %2581 = vrcp.f32 %v730_v8 }
 0x6ef   :  { %v2580_v1 = vpop.eup %2579 }
 0x6f0   :  { %v2582_v6 = vpop.eup %2581  ;;  %v667_v12 = vmul.f32 %v2580_v1, %v3138_v21 }
 0x6f1   :  { %v734_v15 = vmul.f32 %v2582_v6, %v3135_v18 }
 0x74e   :  { %v670_v3 = vpop.permute.xlu0 %669 }
 0x74f   :  { %v672_v4 = vmul.f32 %v2580_v1, %v670_v3 }
 0x751   :  { %674 = vrot.lane.b32.xlu0 %v672_v4, %s2858_s15 }
 0x754   :  { %v737_v9 = vpop.permute.xlu1 %736 }
 0x755   :  { %v739_v10 = vmul.f32 %v2582_v6, %v737_v9 }
 0x757   :  { %741 = vrot.lane.b32.xlu1 %v739_v10, %s2858_s15 }
 0x7c3   :  { %v675_v13 = vpop.permute.xlu0 %674 }
 0x7c4   :  { %v3174_v14 = vadd.f32 %v675_v13, %v667_v12 }
 0x7c6   :  { %2583 = vtanh.f32 %v3174_v14 }
 0x7c9   :  { %v742_v16 = vpop.permute.xlu1 %741 }
 0x7ca   :  { %v3178_v17 = vadd.f32 %v742_v16, %v734_v15 }
 0x7cc   :  { %2585 = vtanh.f32 %v3178_v17 }
 0x7d0   :  { %v2584_v19 = vpop.eup %2583 }
 0x7d1   :  { %680 = vrot.lane.b32.xlu0 %v2584_v19, %s2858_s15 }
 0x7d6   :  { %v2586_v20 = vpop.eup %2585 }
 0x7d7   :  { %747 = vrot.lane.b32.xlu1 %v2586_v20, %s2858_s15 }
 0x843   :  { %v681_v22 = vpop.permute.xlu0 %680 }
 0x844   :  { %v683_v21 = vmul.f32 %v2580_v1, %v681_v22 }
 0x846   :  { %v752_v23 = vpack.c.bf16 %v683_v21, %v683_v21 }
 0x848   :  { %754 = vrot.lane.b32.xlu0 %v752_v23, %s2848_s28 }
 0x849   :  { %v748_v24 = vpop.permute.xlu1 %747 }
 0x84a   :  { %v750_v25 = vmul.f32 %v2582_v6, %v748_v24 }
 0x84c   :  { %v751_v26 = vpack.c.bf16 %v750_v25, %v750_v25 }
 0x84e   :  { %800 = vrot.lane.b32.xlu1 %v751_v26, %s2848_s28 }
 0x8ba   :  { %v755_v18 = vpop.permute.xlu0 %754 }
 0x8bb   :  { %2344 = vmatmul.mubr.msk.bf16.vlgmr.msra.gmra.mrb[16].mxu1 %vm285_vm2, %v755_v18 }
 0x8bc   :  { %2356 = vmatpush3.bf16.msra.mxu1 %v3030_v2  ;;  %2359 = vmatprep.mubr.msk.bf16.mxu1 %vm2856_vm0, %v2855_v0 }
 0x8bd   :  { %2357 = vmatprep.subr.bf16.mxu1 %v2855_v0 }
 0x8c0   :  { %2358 = vmatpush3.bf16.msra.mxu1 %v3041_v5  ;;  %v801_v27 = vpop.permute.xlu1 %800 }
 0x8c1   :  { %2352 = vmatmul.mubr.msk.bf16.vlgmr.msra.gmra.mrb[20].mxu0 %vm285_vm2, %v801_v27  ;;  %2371 = vmatprep.subr.bf16.mxu1 %v2855_v0 }
 0x8c2   :  { %2364 = vmatpush3.bf16.msra.mxu0 %v3066_v28  ;;  %2367 = vmatprep.mubr.msk.bf16.mxu0 %vm2856_vm0, %v2855_v0 }
 0x8c3   :  { %2360 = vmatmul.mubr.msk.bf16.vlgmr.msra.gmra.mrb[20].mxu1 %vm285_vm2, %v801_v27  ;;  %2365 = vmatprep.subr.bf16.mxu0 %v2855_v0 }
 0x8c4   :  { %2372 = vmatpush3.bf16.msra.mxu1 %v3068_v29  ;;  %2375 = vmatprep.mubr.msk.bf16.mxu1 %vm2856_vm0, %v2855_v0 }
 0x8c5   :  { %2373 = vmatprep.subr.bf16.mxu1 %v2855_v0 }
 0x8c6   :  { %2366 = vmatpush3.bf16.msra.mxu0 %v3078_v32 }
 0x8c7   :  { %2379 = vmatprep.subr.bf16.mxu0 %v2855_v0 }
 0x8c8   :  { %2374 = vmatpush3.bf16.msra.mxu1 %v3080_v33 }
 0x8c9   :  { %2387 = vmatprep.subr.bf16.mxu1 %v2855_v0 }
 0x98e   :  { %v793_v30 = vpop.f32.mrb[16].mxu1 }
 0x98f   :  { %v2345_v31 = vpop.f32.mrb[17].mxu1 }
 0x990   :  { %v796_v34 = vpop.f32.mrb[18].mxu1 }
 0x991   :  { %v2346_v35 = vpop.f32.mrb[19].mxu1 }
 0x994   :  { %v839_v36 = vpop.f32.mrb[20].mxu0 }
 0x995   :  { %v840_v42 = vadd.f32 %v839_v36, %v793_v30  ;;  %v2353_v43 = vpop.f32.mrb[21].mxu0 }
 0x996   :  { %v842_v44 = vpop.f32.mrb[22].mxu0  ;;  %v906_v45 = vpop.f32.mrb[20].mxu1 }
 0x997   :  { %v845_v46 = vadd.f32 %v3127_v48, %v840_v42  ;;  %v912_v47 = vadd.f32 %v906_v45, %v234_v37  ;;  %v2354_v49 = vpop.f32.mrb[23].mxu0  ;;  %v2361_v50 = vpop.f32.mrb[21].mxu1  ;;  %v239_v37 = vadd.f32 %v3052_v7, %v3102_v39 }
 0x998   :  { %v909_v51 = vpop.f32.mrb[22].mxu1 }
 0x999   :  { %2587 = vtanh.f32 %v845_v46  ;;  %v2362_v52 = vpop.f32.mrb[23].mxu1  ;;  %v2138_v11 = vmul.f32 -1.442695, %v845_v46  ;;  %v2140_v55 = vmul.f32 -1.442695, %v912_v47 }
 0x99a   :  { %2589 = vtanh.f32 %v912_v47 }
 0x99b   :  { %2591 = vpow2.f32 %v2138_v11 }
 0x99c   :  { %2593 = vpow2.f32 %v2140_v55 }
 0x9a3   :  { %v2588_v53 = vpop.eup %2587 }
 0x9a4   :  { %v2590_v54 = vpop.eup %2589  ;;  %855 = vrot.lane.b32.xlu0 %v2588_v53, %s2858_s15 }
 0x9a5   :  { %922 = vrot.lane.b32.xlu1 %v2590_v54, %s2858_s15  ;;  %v2592_v56 = vpop.eup %2591 }
 0x9a6   :  { %v2594_v57 = vpop.eup %2593  ;;  %v849_v58 = vadd.f32 1.0, %v2592_v56 }
 0x9a7   :  { %v916_v59 = vadd.f32 1.0, %v2594_v57 }
 0x9a8   :  { %2595 = vrcp.f32 %v849_v58 }
 0x9a9   :  { %2597 = vrcp.f32 %v916_v59 }
 0x9b2   :  { %v2596_v60 = vpop.eup %2595 }
 0x9b3   :  { %v2598_v62 = vpop.eup %2597  ;;  %v853_v3 = vmul.f32 %v2596_v60, %v3174_v14 }
 0x9b4   :  { %v920_v4 = vmul.f32 %v2598_v62, %v3178_v17 }
 0xa16   :  { %v856_v61 = vpop.permute.xlu0 %855 }
 0xa17   :  { %v923_v63 = vpop.permute.xlu1 %922  ;;  %v858_v8 = vmul.f32 %v2596_v60, %v856_v61 }
 0xa18   :  { %v925_v1 = vmul.f32 %v2598_v62, %v923_v63 }
 0xa19   :  { %860 = vrot.lane.b32.xlu0 %v858_v8, %s2858_s15 }
 0xa1a   :  { %927 = vrot.lane.b32.xlu1 %v925_v1, %s2858_s15 }
 0xa8b   :  { %v861_v6 = vpop.permute.xlu0 %860 }
 0xa8c   :  { %v928_v9 = vpop.permute.xlu1 %927  ;;  %v3215_v10 = vadd.f32 %v861_v6, %v853_v3 }
 0xa8d   :  { %v3217_v12 = vadd.f32 %v928_v9, %v920_v4 }
 0xa8e   :  { %2599 = vtanh.f32 %v3215_v10 }
 0xa8f   :  { %2601 = vtanh.f32 %v3217_v12 }
 0xa98   :  { %v2600_v13 = vpop.eup %2599 }
 0xa99   :  { %v2602_v15 = vpop.eup %2601  ;;  %866 = vrot.lane.b32.xlu0 %v2600_v13, %s2858_s15 }
 0xa9a   :  { %933 = vrot.lane.b32.xlu1 %v2602_v15, %s2858_s15 }
 0xb0b   :  { %v867_v16 = vpop.permute.xlu0 %866 }
 0xb0c   :  { %v934_v14 = vpop.permute.xlu1 %933  ;;  %v869_v19 = vmul.f32 %v2596_v60, %v867_v16 }
 0xb0d   :  { %v936_v17 = vmul.f32 %v2598_v62, %v934_v14 }
 0xb0e   :  { %v938_v20 = vpack.c.bf16 %v869_v19, %v869_v19 }
 0xb0f   :  { %v937_v22 = vpack.c.bf16 %v936_v17, %v936_v17 }
 0xb10   :  { %940 = vrot.lane.b32.xlu0 %v938_v20, %s2848_s28 }
 0xb11   :  { %986 = vrot.lane.b32.xlu1 %v937_v22, %s2848_s28 }
 0xb82   :  { %v941_v21 = vpop.permute.xlu0 %940 }
 0xb83   :  { %v987_v23 = vpop.permute.xlu1 %986  ;;  %2368 = vmatmul.mubr.msk.bf16.vlgmr.msra.gmra.mrb[24].mxu0 %vm285_vm2, %v941_v21 }
 0xb84   :  { %2376 = vmatmul.mubr.msk.bf16.vlgmr.msra.gmra.mrb[24].mxu1 %vm285_vm2, %v987_v23  ;;  %2380 = vmatpush3.bf16.msra.mxu0 %v3030_v2 }
 0xb85   :  { %2381 = vmatprep.subr.bf16.mxu0 %v2855_v0  ;;  %2383 = vmatprep.mubr.msk.bf16.mxu0 %vm2856_vm0, %v2855_v0 }
 0xb86   :  { %2388 = vmatpush3.bf16.msra.mxu1 %v3066_v28  ;;  %2391 = vmatprep.mubr.msk.bf16.mxu1 %vm2856_vm0, %v2855_v0 }
 0xb87   :  { %2389 = vmatprep.subr.bf16.mxu1 %v2855_v0 }
 0xb88   :  { %2382 = vmatpush3.bf16.msra.mxu0 %v3041_v5 }
 0xb89   :  { %2395 = vmatprep.subr.bf16.mxu0 %v2855_v0 }
 0xb8a   :  { %2390 = vmatpush3.bf16.msra.mxu1 %v3078_v32 }
 0xb8b   :  { %2384 = vmatmul.mubr.msk.bf16.vlgmr.msra.gmra.mrb[28].mxu0 %vm285_vm2, %v987_v23  ;;  %2403 = vmatprep.subr.bf16.mxu1 %v2855_v0 }
 0xb8c   :  { %2396 = vmatpush3.bf16.msra.mxu0 %v3068_v29  ;;  %2399 = vmatprep.mubr.msk.bf16.mxu0 %vm2856_vm0, %v2855_v0 }
 0xb8d   :  { %2397 = vmatprep.subr.bf16.mxu0 %v2855_v0 }
 0xb90   :  { %2398 = vmatpush3.bf16.msra.mxu0 %v3080_v33 }
 0xb91   :  { %2411 = vmatprep.subr.bf16.mxu0 %v2855_v0 }
 0xc56   :  { %v979_v24 = vpop.f32.mrb[24].mxu0 }
 0xc57   :  { %v1025_v25 = vpop.f32.mrb[24].mxu1  ;;  %v2369_v26 = vpop.f32.mrb[25].mxu0 }
 0xc58   :  { %v1026_v18 = vadd.f32 %v1025_v25, %v979_v24  ;;  %v2377_v27 = vpop.f32.mrb[25].mxu1  ;;  %v982_v30 = vpop.f32.mrb[26].mxu0  ;;  %v242_v24 = vadd.f32 %v3052_v7, %v3106_v41 }
 0xc59   :  { %v1028_v31 = vpop.f32.mrb[26].mxu1  ;;  %v2370_v34 = vpop.f32.mrb[27].mxu0 }
 0xc5a   :  { %v1031_v35 = vadd.f32 %v3127_v48, %v1026_v18  ;;  %v2378_v36 = vpop.f32.mrb[27].mxu1 }
 0xc5c   :  { %2603 = vtanh.f32 %v1031_v35  ;;  %v2143_v50 = vmul.f32 -1.442695, %v1031_v35 }
 0xc5e   :  { %v1092_v42 = vpop.f32.mrb[28].mxu0 }
 0xc5f   :  { %v1098_v43 = vadd.f32 %v1092_v42, %v239_v37  ;;  %v2385_v44 = vpop.f32.mrb[29].mxu0 }
 0xc60   :  { %v1095_v45 = vpop.f32.mrb[30].mxu0 }
 0xc61   :  { %2605 = vtanh.f32 %v1098_v43  ;;  %v2386_v46 = vpop.f32.mrb[31].mxu0  ;;  %v2145_v51 = vmul.f32 -1.442695, %v1098_v43 }
 0xc62   :  { %2607 = vpow2.f32 %v2143_v50 }
 0xc63   :  { %2609 = vpow2.f32 %v2145_v51 }
 0xc66   :  { %v2604_v47 = vpop.eup %2603 }
 0xc67   :  { %1041 = vrot.lane.b32.xlu0 %v2604_v47, %s2858_s15 }
 0xc6b   :  { %v2606_v49 = vpop.eup %2605 }
 0xc6c   :  { %1108 = vrot.lane.b32.xlu1 %v2606_v49, %s2858_s15  ;;  %v2608_v52 = vpop.eup %2607 }
 0xc6d   :  { %v1035_v53 = vadd.f32 1.0, %v2608_v52  ;;  %v2610_v54 = vpop.eup %2609 }
 0xc6e   :  { %v1102_v39 = vadd.f32 1.0, %v2610_v54 }
 0xc6f   :  { %2611 = vrcp.f32 %v1035_v53 }
 0xc70   :  { %2613 = vrcp.f32 %v1102_v39 }
 0xc79   :  { %v2612_v11 = vpop.eup %2611 }
 0xc7a   :  { %v2614_v57 = vpop.eup %2613  ;;  %v1039_v60 = vmul.f32 %v2612_v11, %v3215_v10 }
 0xc7b   :  { %v1106_v63 = vmul.f32 %v2614_v57, %v3217_v12 }
 0xcd9   :  { %v1042_v55 = vpop.permute.xlu0 %1041 }
 0xcda   :  { %v1044_v56 = vmul.f32 %v2612_v11, %v1042_v55 }
 0xcdc   :  { %1046 = vrot.lane.b32.xlu0 %v1044_v56, %s2858_s15 }
 0xcde   :  { %v1109_v58 = vpop.permute.xlu1 %1108 }
 0xcdf   :  { %v1111_v59 = vmul.f32 %v2614_v57, %v1109_v58 }
 0xce1   :  { %1113 = vrot.lane.b32.xlu1 %v1111_v59, %s2858_s15 }
 0xd4e   :  { %v1047_v61 = vpop.permute.xlu0 %1046 }
 0xd4f   :  { %v3254_v62 = vadd.f32 %v1047_v61, %v1039_v60 }
 0xd51   :  { %2615 = vtanh.f32 %v3254_v62 }
 0xd53   :  { %v1114_v8 = vpop.permute.xlu1 %1113 }
 0xd54   :  { %v3258_v1 = vadd.f32 %v1114_v8, %v1106_v63 }
 0xd56   :  { %2617 = vtanh.f32 %v3258_v1 }
 0xd5b   :  { %v2616_v3 = vpop.eup %2615 }
 0xd5c   :  { %1052 = vrot.lane.b32.xlu0 %v2616_v3, %s2858_s15 }
 0xd60   :  { %v2618_v4 = vpop.eup %2617 }
 0xd61   :  { %1119 = vrot.lane.b32.xlu1 %v2618_v4, %s2858_s15 }
 0xdce   :  { %v1053_v6 = vpop.permute.xlu0 %1052 }
 0xdcf   :  { %v1055_v9 = vmul.f32 %v2612_v11, %v1053_v6  ;;  %v3307_v6 = vld [vmem:[#allocation8] sm:$0xff]  }
 0xdd1   :  { %v1124_v10 = vpack.c.bf16 %v1055_v9, %v1055_v9 }
 0xdd3   :  { %1126 = vrot.lane.b32.xlu0 %v1124_v10, %s2848_s28  ;;  %v1120_v13 = vpop.permute.xlu1 %1119 }
 0xdd4   :  { %v1122_v15 = vmul.f32 %v2614_v57, %v1120_v13 }
 0xdd6   :  { %v1123_v16 = vpack.c.bf16 %v1122_v15, %v1122_v15 }
 0xdd8   :  { %1172 = vrot.lane.b32.xlu1 %v1123_v16, %s2848_s28 }
 0xe45   :  { %v1127_v12 = vpop.permute.xlu0 %1126 }
 0xe46   :  { %2392 = vmatmul.mubr.msk.bf16.vlgmr.msra.gmra.mrb[28].mxu1 %vm285_vm2, %v1127_v12 }
 0xe47   :  { %2404 = vmatpush3.bf16.msra.mxu1 %v3030_v2  ;;  %2407 = vmatprep.mubr.msk.bf16.mxu1 %vm2856_vm0, %v2855_v0 }
 0xe48   :  { %2405 = vmatprep.subr.bf16.mxu1 %v2855_v0 }
 0xe4a   :  { %v1173_v14 = vpop.permute.xlu1 %1172 }
 0xe4b   :  { %2406 = vmatpush3.bf16.msra.mxu1 %v3041_v5  ;;  %2400 = vmatmul.mubr.msk.bf16.vlgmr.msra.gmra.mrb[32].mxu0 %vm285_vm2, %v1173_v14 }
 0xe4c   :  { %2419 = vmatprep.subr.bf16.mxu1 %v2855_v0  ;;  %2412 = vmatpush3.bf16.msra.mxu0 %v3066_v28 }
 0xe4d   :  { %2413 = vmatprep.subr.bf16.mxu0 %v2855_v0  ;;  %2415 = vmatprep.mubr.msk.bf16.mxu0 %vm2856_vm0, %v2855_v0 }
 0xe4e   :  { %2408 = vmatmul.mubr.msk.bf16.vlgmr.msra.gmra.mrb[32].mxu1 %vm285_vm2, %v1173_v14  ;;  %v247_v14 = vadd.f32 %v3100_v38, %v3052_v7 }
 0xe4f   :  { %2420 = vmatpush3.bf16.msra.mxu1 %v3068_v29  ;;  %2423 = vmatprep.mubr.msk.bf16.mxu1 %vm2856_vm0, %v2855_v0 }
 0xe50   :  { %2421 = vmatprep.subr.bf16.mxu1 %v2855_v0  ;;  %2414 = vmatpush3.bf16.msra.mxu0 %v3078_v32 }
 0xe51   :  { %2427 = vmatprep.subr.bf16.mxu0 %v2855_v0 }
 0xe53   :  { %2422 = vmatpush3.bf16.msra.mxu1 %v3080_v33 }
 0xe54   :  { %2435 = vmatprep.subr.bf16.mxu1 %v2855_v0 }
 0xf19   :  { %v1165_v2 = vpop.f32.mrb[28].mxu1 }
 0xf1a   :  { %v2393_v19 = vpop.f32.mrb[29].mxu1 }
 0xf1b   :  { %v1168_v17 = vpop.f32.mrb[30].mxu1 }
 0xf1c   :  { %v2394_v20 = vpop.f32.mrb[31].mxu1 }
 0xf1e   :  { %v1211_v22 = vpop.f32.mrb[32].mxu0 }
 0xf1f   :  { %v1212_v21 = vadd.f32 %v1211_v22, %v1165_v2  ;;  %v2401_v23 = vpop.f32.mrb[33].mxu0 }
 0xf20   :  { %v1214_v25 = vpop.f32.mrb[34].mxu0 }
 0xf21   :  { %v1217_v26 = vadd.f32 %v3127_v48, %v1212_v21  ;;  %v1278_v18 = vpop.f32.mrb[32].mxu1  ;;  %v2402_v27 = vpop.f32.mrb[35].mxu0 }
 0xf22   :  { %v1284_v30 = vadd.f32 %v1278_v18, %v242_v24  ;;  %v2409_v31 = vpop.f32.mrb[33].mxu1 }
 0xf23   :  { %2619 = vtanh.f32 %v1217_v26  ;;  %v1281_v34 = vpop.f32.mrb[34].mxu1  ;;  %v2148_v42 = vmul.f32 -1.442695, %v1217_v26 }
 0xf24   :  { %2621 = vtanh.f32 %v1284_v30  ;;  %v2410_v35 = vpop.f32.mrb[35].mxu1  ;;  %v2150_v43 = vmul.f32 -1.442695, %v1284_v30 }
 0xf25   :  { %2623 = vpow2.f32 %v2148_v42 }
 0xf26   :  { %2625 = vpow2.f32 %v2150_v43 }
 0xf2d   :  { %v2620_v36 = vpop.eup %2619 }
 0xf2e   :  { %v2622_v37 = vpop.eup %2621  ;;  %1227 = vrot.lane.b32.xlu0 %v2620_v36, %s2858_s15 }
 0xf2f   :  { %1294 = vrot.lane.b32.xlu1 %v2622_v37, %s2858_s15  ;;  %v2624_v41 = vpop.eup %2623 }
 0xf30   :  { %v2626_v44 = vpop.eup %2625  ;;  %v1221_v45 = vadd.f32 1.0, %v2624_v41 }
 0xf31   :  { %v1288_v46 = vadd.f32 1.0, %v2626_v44 }
 0xf32   :  { %2627 = vrcp.f32 %v1221_v45 }
 0xf33   :  { %2629 = vrcp.f32 %v1288_v46 }
 0xf3c   :  { %v2628_v47 = vpop.eup %2627 }
 0xf3d   :  { %v2630_v50 = vpop.eup %2629  ;;  %v1225_v54 = vmul.f32 %v2628_v47, %v3254_v62 }
 0xf3e   :  { %v1292_v39 = vmul.f32 %v2630_v50, %v3258_v1 }
 0xfa0   :  { %v1228_v49 = vpop.permute.xlu0 %1227 }
 0xfa1   :  { %v1295_v51 = vpop.permute.xlu1 %1294  ;;  %v1230_v52 = vmul.f32 %v2628_v47, %v1228_v49 }
 0xfa2   :  { %v1297_v53 = vmul.f32 %v2630_v50, %v1295_v51 }
 0xfa3   :  { %1232 = vrot.lane.b32.xlu0 %v1230_v52, %s2858_s15 }
 0xfa4   :  { %1299 = vrot.lane.b32.xlu1 %v1297_v53, %s2858_s15 }
0x1015   :  { %v1233_v11 = vpop.permute.xlu0 %1232 }
0x1016   :  { %v1300_v55 = vpop.permute.xlu1 %1299  ;;  %v3295_v56 = vadd.f32 %v1233_v11, %v1225_v54  ;;  %v2676_v11 = vld [vmem:[#allocation8 + $0x8] sm:$0xff]  }
0x1017   :  { %v3297_v57 = vadd.f32 %v1300_v55, %v1292_v39  ;;  %v2677_v55 = vld [vmem:[#allocation11] sm:$0xff]  }
0x1018   :  { %2631 = vtanh.f32 %v3295_v56 }
0x1019   :  { %2633 = vtanh.f32 %v3297_v57 }
0x1022   :  { %v2632_v58 = vpop.eup %2631 }
0x1023   :  { %v2634_v59 = vpop.eup %2633  ;;  %1238 = vrot.lane.b32.xlu0 %v2632_v58, %s2858_s15  ;;  %v2680_v58 = vld [vmem:[#allocation9 + $0x8] sm:$0xff]  }
0x1024   :  { %1305 = vrot.lane.b32.xlu1 %v2634_v59, %s2858_s15 }
0x1095   :  { %v1239_v60 = vpop.permute.xlu0 %1238 }
0x1096   :  { %v1306_v61 = vpop.permute.xlu1 %1305  ;;  %v1241_v62 = vmul.f32 %v2628_v47, %v1239_v60 }
0x1097   :  { %v1308_v63 = vmul.f32 %v2630_v50, %v1306_v61 }
0x1098   :  { %v1310_v8 = vpack.c.bf16 %v1241_v62, %v1241_v62 }
0x1099   :  { %v1309_v1 = vpack.c.bf16 %v1308_v63, %v1308_v63 }
0x109a   :  { %1312 = vrot.lane.b32.xlu0 %v1310_v8, %s2848_s28 }
0x109b   :  { %1358 = vrot.lane.b32.xlu1 %v1309_v1, %s2848_s28 }
0x110c   :  { %v1313_v3 = vpop.permute.xlu0 %1312 }
0x110d   :  { %v1359_v4 = vpop.permute.xlu1 %1358  ;;  %2416 = vmatmul.mubr.msk.bf16.vlgmr.msra.gmra.mrb[36].mxu0 %vm285_vm2, %v1313_v3  ;;  %v2681_v3 = vld [vmem:[%s3459_s4] ss:$0 sm:$0xff] }
0x110e   :  { %2424 = vmatmul.mubr.msk.bf16.vlgmr.msra.gmra.mrb[36].mxu1 %vm285_vm2, %v1359_v4  ;;  %2428 = vmatpush3.bf16.msra.mxu0 %v3307_v6 }
0x110f   :  { %2429 = vmatprep.subr.bf16.mxu0 %v2855_v0  ;;  %2431 = vmatprep.mubr.msk.bf16.mxu0 %vm2856_vm0, %v2855_v0 }
0x1110   :  { %2436 = vmatpush3.bf16.msra.mxu1 %v3066_v28  ;;  %2439 = vmatprep.mubr.msk.bf16.mxu1 %vm2856_vm0, %v2855_v0 }
0x1111   :  { %2437 = vmatprep.subr.bf16.mxu1 %v2855_v0 }
0x1112   :  { %2430 = vmatpush3.bf16.msra.mxu0 %v3041_v5 }
0x1113   :  { %2443 = vmatprep.subr.bf16.mxu0 %v2855_v0 }
0x1114   :  { %2438 = vmatpush3.bf16.msra.mxu1 %v3078_v32 }
0x1115   :  { %2432 = vmatmul.mubr.msk.bf16.vlgmr.msra.gmra.mrb[40].mxu0 %vm285_vm2, %v1359_v4  ;;  %2451 = vmatprep.subr.bf16.mxu1 %v2855_v0  ;;  %v250_v4 = vadd.f32 %v2681_v3, %v3104_v40 }
0x1116   :  { %2444 = vmatpush3.bf16.msra.mxu0 %v3068_v29  ;;  %2447 = vmatprep.mubr.msk.bf16.mxu0 %vm2856_vm0, %v2855_v0 }
0x1117   :  { %2445 = vmatprep.subr.bf16.mxu0 %v2855_v0 }
0x111a   :  { %2446 = vmatpush3.bf16.msra.mxu0 %v3080_v33 }
0x111b   :  { %2459 = vmatprep.subr.bf16.mxu0 %v2855_v0 }
0x11e0   :  { %v1351_v5 = vpop.f32.mrb[36].mxu0 }
0x11e1   :  { %v1397_v28 = vpop.f32.mrb[36].mxu1  ;;  %v2417_v9 = vpop.f32.mrb[37].mxu0 }
0x11e2   :  { %v1398_v10 = vadd.f32 %v1397_v28, %v1351_v5  ;;  %v2425_v32 = vpop.f32.mrb[37].mxu1  ;;  %v1354_v13 = vpop.f32.mrb[38].mxu0 }
0x11e3   :  { %v1400_v15 = vpop.f32.mrb[38].mxu1  ;;  %v2418_v16 = vpop.f32.mrb[39].mxu0 }
0x11e4   :  { %v1403_v12 = vadd.f32 %v3127_v48, %v1398_v10  ;;  %v2426_v29 = vpop.f32.mrb[39].mxu1 }
0x11e6   :  { %2635 = vtanh.f32 %v1403_v12  ;;  %v2153_v23 = vmul.f32 -1.442695, %v1403_v12 }
0x11e8   :  { %v1464_v2 = vpop.f32.mrb[40].mxu0 }
0x11e9   :  { %v1470_v19 = vadd.f32 %v1464_v2, %v247_v14  ;;  %v2433_v33 = vpop.f32.mrb[41].mxu0 }
0x11ea   :  { %v1467_v17 = vpop.f32.mrb[42].mxu0 }
0x11eb   :  { %2637 = vtanh.f32 %v1470_v19  ;;  %v2434_v20 = vpop.f32.mrb[43].mxu0  ;;  %v2155_v24 = vmul.f32 -1.442695, %v1470_v19 }
0x11ec   :  { %2639 = vpow2.f32 %v2153_v23 }
0x11ed   :  { %2641 = vpow2.f32 %v2155_v24 }
0x11f0   :  { %v2636_v22 = vpop.eup %2635 }
0x11f1   :  { %1413 = vrot.lane.b32.xlu0 %v2636_v22, %s2858_s15 }
0x11f5   :  { %v2638_v21 = vpop.eup %2637 }
0x11f6   :  { %1480 = vrot.lane.b32.xlu1 %v2638_v21, %s2858_s15  ;;  %v2640_v25 = vpop.eup %2639 }
0x11f7   :  { %v1407_v26 = vadd.f32 1.0, %v2640_v25  ;;  %v2642_v18 = vpop.eup %2641 }
0x11f8   :  { %v1474_v7 = vadd.f32 1.0, %v2642_v18 }
0x11f9   :  { %2643 = vrcp.f32 %v1407_v26 }
0x11fa   :  { %2645 = vrcp.f32 %v1474_v7 }
0x1203   :  { %v2644_v38 = vpop.eup %2643 }
0x1204   :  { %v2646_v31 = vpop.eup %2645  ;;  %v1411_v36 = vmul.f32 %v2644_v38, %v3295_v56  ;;  %v2678_v56 = vld [vmem:[#allocation9] sm:$0xff]  }
0x1205   :  { %v1478_v43 = vmul.f32 %v2646_v31, %v3297_v57  ;;  %v2679_v57 = vld [vmem:[#allocation11 + $0x8] sm:$0xff]  }
0x1263   :  { %v1414_v27 = vpop.permute.xlu0 %1413 }
0x1264   :  { %v1416_v30 = vmul.f32 %v2644_v38, %v1414_v27 }
0x1266   :  { %1418 = vrot.lane.b32.xlu0 %v1416_v30, %s2858_s15 }
0x1268   :  { %v1481_v34 = vpop.permute.xlu1 %1480 }
0x1269   :  { %v1483_v35 = vmul.f32 %v2646_v31, %v1481_v34 }
0x126b   :  { %1485 = vrot.lane.b32.xlu1 %v1483_v35, %s2858_s15 }
0x12d8   :  { %v1419_v37 = vpop.permute.xlu0 %1418 }
0x12d9   :  { %v3336_v42 = vadd.f32 %v1419_v37, %v1411_v36 }
0x12db   :  { %2647 = vtanh.f32 %v3336_v42 }
0x12dd   :  { %v1486_v41 = vpop.permute.xlu1 %1485 }
0x12de   :  { %v3340_v44 = vadd.f32 %v1486_v41, %v1478_v43 }
0x12e0   :  { %2649 = vtanh.f32 %v3340_v44 }
0x12e5   :  { %v2648_v45 = vpop.eup %2647 }
0x12e6   :  { %1424 = vrot.lane.b32.xlu0 %v2648_v45, %s2858_s15 }
0x12ea   :  { %v2650_v46 = vpop.eup %2649 }
0x12eb   :  { %1491 = vrot.lane.b32.xlu1 %v2650_v46, %s2858_s15 }
0x1358   :  { %v1425_v47 = vpop.permute.xlu0 %1424 }
0x1359   :  { %v1427_v49 = vmul.f32 %v2644_v38, %v1425_v47 }
0x135b   :  { %v1496_v50 = vpack.c.bf16 %v1427_v49, %v1427_v49 }
0x135d   :  { %1498 = vrot.lane.b32.xlu0 %v1496_v50, %s2848_s28  ;;  %v1492_v51 = vpop.permute.xlu1 %1491 }
0x135e   :  { %v1494_v52 = vmul.f32 %v2646_v31, %v1492_v51 }
0x1360   :  { %v1495_v53 = vpack.c.bf16 %v1494_v52, %v1494_v52 }
0x1362   :  { %1544 = vrot.lane.b32.xlu1 %v1495_v53, %s2848_s28  ;;  %v2682_v53 = vld [vmem:[%s3462_s7] ss:$0 sm:$0xff] }
0x13cf   :  { %v1499_v54 = vpop.permute.xlu0 %1498 }
0x13d0   :  { %2440 = vmatmul.mubr.msk.bf16.vlgmr.msra.gmra.mrb[40].mxu1 %vm285_vm2, %v1499_v54 }
0x13d1   :  { %2452 = vmatpush3.bf16.msra.mxu1 %v3307_v6  ;;  %2455 = vmatprep.mubr.msk.bf16.mxu1 %vm2856_vm0, %v2855_v0 }
0x13d2   :  { %2453 = vmatprep.subr.bf16.mxu1 %v2855_v0 }
0x13d4   :  { %v1545_v39 = vpop.permute.xlu1 %1544 }
0x13d5   :  { %2454 = vmatpush3.bf16.msra.mxu1 %v2676_v11  ;;  %2448 = vmatmul.mubr.msk.bf16.vlgmr.msra.gmra.mrb[44].mxu0 %vm285_vm2, %v1545_v39 }
0x13d6   :  { %2467 = vmatprep.subr.bf16.mxu1 %v2855_v0  ;;  %2460 = vmatpush3.bf16.msra.mxu0 %v2677_v55 }
0x13d7   :  { %2461 = vmatprep.subr.bf16.mxu0 %v2855_v0  ;;  %2463 = vmatprep.mubr.msk.bf16.mxu0 %vm2856_vm0, %v2855_v0 }
0x13d8   :  { %2456 = vmatmul.mubr.msk.bf16.vlgmr.msra.gmra.mrb[44].mxu1 %vm285_vm2, %v1545_v39 }
0x13d9   :  { %2468 = vmatpush3.bf16.msra.mxu1 %v2678_v56  ;;  %2471 = vmatprep.mubr.msk.bf16.mxu1 %vm2856_vm0, %v2855_v0 }
0x13da   :  { %2469 = vmatprep.subr.bf16.mxu1 %v2855_v0  ;;  %2462 = vmatpush3.bf16.msra.mxu0 %v2679_v57 }
0x13db   :  { %2475 = vmatprep.subr.bf16.mxu0 %v2855_v0 }
0x13dd   :  { %2470 = vmatpush3.bf16.msra.mxu1 %v2680_v58 }
0x13de   :  { %2481 = vmatprep.subr.bf16.mxu1 %v2855_v0 }
0x14a3   :  { %v1537_v59 = vpop.f32.mrb[40].mxu1 }
0x14a4   :  { %v2441_v60 = vpop.f32.mrb[41].mxu1 }
0x14a5   :  { %v1540_v61 = vpop.f32.mrb[42].mxu1 }
0x14a6   :  { %v2442_v62 = vpop.f32.mrb[43].mxu1 }
0x14a8   :  { %v1583_v63 = vpop.f32.mrb[44].mxu0 }
0x14a9   :  { %v1584_v8 = vadd.f32 %v1583_v63, %v1537_v59  ;;  %v2449_v1 = vpop.f32.mrb[45].mxu0 }
0x14aa   :  { %v1586_v6 = vpop.f32.mrb[46].mxu0  ;;  %v2537_v1 = vld [vmem:[#allocation12] sm:$0xff]  }
0x14ab   :  { %v1589_v5 = vadd.f32 %v3127_v48, %v1584_v8  ;;  %v1650_v28 = vpop.f32.mrb[44].mxu1  ;;  %v2450_v9 = vpop.f32.mrb[47].mxu0  ;;  %v1806_v8 = vld [vmem:[%s3464_s9] sm:$0xf] }
0x14ac   :  { %v1656_v10 = vadd.f32 %v1650_v28, %v250_v4  ;;  %v2457_v32 = vpop.f32.mrb[45].mxu1  ;;  %v1813_v3 = vsel %vm1811_vm3, %v1806_v8, 0  ;;  %v2538_v4 = vld [vmem:[#allocation12 + $0x8] sm:$0xff]   ;;  %v1805_v6 = vld [vmem:[#allocation3] sm:$0xf] }
0x14ad   :  { %2651 = vtanh.f32 %v1589_v5  ;;  %v1653_v13 = vpop.f32.mrb[46].mxu1  ;;  %v2158_v29 = vmul.f32 -1.442695, %v1589_v5  ;;  %v2539_v28 = vld [vmem:[%s3466_s11] sm:$0xff]   ;;  %v2540_v9 = vld [vmem:[%s3466_s11 + $0x8] sm:$0xff]  }
0x14ae   :  { %2653 = vtanh.f32 %v1656_v10  ;;  %v2458_v15 = vpop.f32.mrb[47].mxu1  ;;  %v2160_v14 = vmul.f32 -1.442695, %v1656_v10 }
0x14af   :  { %2655 = vpow2.f32 %v2158_v29 }
0x14b0   :  { %2657 = vpow2.f32 %v2160_v14 }
0x14b7   :  { %v2652_v16 = vpop.eup %2651 }
0x14b8   :  { %v2654_v12 = vpop.eup %2653  ;;  %1599 = vrot.lane.b32.xlu0 %v2652_v16, %s2858_s15 }
0x14b9   :  { %1666 = vrot.lane.b32.xlu1 %v2654_v12, %s2858_s15  ;;  %v2656_v40 = vpop.eup %2655 }
0x14ba   :  { %v2658_v48 = vpop.eup %2657  ;;  %v1593_v2 = vadd.f32 1.0, %v2656_v40  ;;  %v2541_v40 = vld [vmem:[%s3466_s11 + $0x10] sm:$0xff]  }
0x14bb   :  { %v1660_v19 = vadd.f32 1.0, %v2658_v48  ;;  %v2542_v48 = vld [vmem:[%s3466_s11 + $0x18] sm:$0xff]  }
0x14bc   :  { %2659 = vrcp.f32 %v1593_v2  ;;  %v2543_v2 = vld [vmem:[%s3468_s13] sm:$0xff]  }
0x14bd   :  { %2661 = vrcp.f32 %v1660_v19  ;;  %v2544_v19 = vld [vmem:[%s3468_s13 + $0x8] sm:$0xff]  }
0x14c6   :  { %v2660_v33 = vpop.eup %2659 }
0x14c7   :  { %v2662_v20 = vpop.eup %2661  ;;  %v1597_v24 = vmul.f32 %v2660_v33, %v3336_v42 }
0x14c8   :  { %v1664_v25 = vmul.f32 %v2662_v20, %v3340_v44 }
0x152a   :  { %v1600_v17 = vpop.permute.xlu0 %1599 }
0x152b   :  { %v1667_v22 = vpop.permute.xlu1 %1666  ;;  %v1602_v21 = vmul.f32 %v2660_v33, %v1600_v17  ;;  %v2168_v17 = vld [vmem:[%s3465_s10] ss:$0 sm:$0xff] }
0x152c   :  { %v1669_v23 = vmul.f32 %v2662_v20, %v1667_v22 }
0x152d   :  { %1604 = vrot.lane.b32.xlu0 %v1602_v21, %s2858_s15 }
0x152e   :  { %1671 = vrot.lane.b32.xlu1 %v1669_v23, %s2858_s15 }
0x159f   :  { %v1605_v26 = vpop.permute.xlu0 %1604 }
0x15a0   :  { %v1672_v18 = vpop.permute.xlu1 %1671  ;;  %v1607_v7 = vadd.f32 %v1605_v26, %v1597_v24 }
0x15a1   :  { %v1674_v38 = vadd.f32 %v1672_v18, %v1664_v25  ;;  %v2545_v18 = vld [vmem:[%s3468_s13 + $0x10] sm:$0xff]  }
0x15a2   :  { %2663 = vtanh.f32 %v1607_v7 }
0x15a3   :  { %2665 = vtanh.f32 %v1674_v38  ;;  %v2169_v38 = vld [vmem:[%s3467_s12] ss:$0 sm:$0xff] }
0x15ac   :  { %v2664_v27 = vpop.eup %2663 }
0x15ad   :  { %v2666_v30 = vpop.eup %2665  ;;  %1610 = vrot.lane.b32.xlu0 %v2664_v27, %s2858_s15 }
0x15ae   :  { %1677 = vrot.lane.b32.xlu1 %v2666_v30, %s2858_s15 }
0x161f   :  { %v1611_v31 = vpop.permute.xlu0 %1610 }
0x1620   :  { %v1678_v34 = vpop.permute.xlu1 %1677  ;;  %v1613_v35 = vmul.f32 %v2660_v33, %v1611_v31 }
0x1621   :  { %v1680_v36 = vmul.f32 %v2662_v20, %v1678_v34 }
0x1622   :  { %v1682_v37 = vpack.c.bf16 %v1613_v35, %v1613_v35 }
0x1623   :  { %v1681_v42 = vpack.c.bf16 %v1680_v36, %v1680_v36 }
0x1624   :  { %1684 = vrot.lane.b32.xlu0 %v1682_v37, %s2848_s28 }
0x1625   :  { %1730 = vrot.lane.b32.xlu1 %v1681_v42, %s2848_s28 }
0x1696   :  { %v1685_v43 = vpop.permute.xlu0 %1684 }
0x1697   :  { %v1731_v41 = vpop.permute.xlu1 %1730  ;;  %2464 = vmatmul.mubr.msk.bf16.vlgmr.msra.gmra.mrb[48].mxu0 %vm285_vm2, %v1685_v43 }
0x1698   :  { %2472 = vmatmul.mubr.msk.bf16.vlgmr.msra.gmra.mrb[48].mxu1 %vm285_vm2, %v1731_v41  ;;  %2477 = vmatprep.mubr.msk.bf16.mxu0 %vm2856_vm0, %v2855_v0 }
0x1699   :  { %2485 = vmatprep.mubr.msk.bf16.mxu1 %vm2856_vm0, %v2855_v0  ;;  %2476 = vmatpush3.bf16.msra.mxu0 %v1813_v3 }
0x169a   :  { %2482 = vmatpush3.bf16.msra.mxu1 %v2537_v1  ;;  %2489 = vmatprep.subr.bf16.mxu0 %v2855_v0 }
0x169b   :  { %2483 = vmatprep.subr.bf16.mxu1 %v2855_v0 }
0x169e   :  { %2484 = vmatpush3.bf16.msra.mxu1 %v2538_v4 }
0x169f   :  { %2478 = vmatmul.mubr.msk.bf16.vlgmr.msra.gmra.mrb[52].mxu0 %vm1807_vm4, %v1805_v6  ;;  %2501 = vmatprep.subr.bf16.mxu1 %v2855_v0 }
0x16a0   :  { %2497 = vmatprep.mubr.msk.bf16.mxu0 %vm2856_vm0, %v2855_v0  ;;  %2490 = vmatpush3.bf16.msra.mxu0 %v2539_v28 }
0x16a1   :  { %2491 = vmatprep.subr.bf16.mxu0 %v2855_v0 }
0x16a4   :  { %2492 = vmatpush3.bf16.msra.mxu0 %v2540_v9 }
0x16a5   :  { %2493 = vmatprep.subr.bf16.mxu0 %v2855_v0 }
0x16a8   :  { %2494 = vmatpush3.bf16.msra.mxu0 %v2541_v40 }
0x16a9   :  { %2495 = vmatprep.subr.bf16.mxu0 %v2855_v0 }
0x16ac   :  { %2496 = vmatpush3.bf16.msra.mxu0 %v2542_v48 }
0x176a   :  { %v1723_v44 = vpop.f32.mrb[48].mxu0 }
0x176b   :  { %v1769_v45 = vpop.f32.mrb[48].mxu1  ;;  %v2465_v46 = vpop.f32.mrb[49].mxu0 }
0x176c   :  { %v1770_v47 = vadd.f32 %v1769_v45, %v1723_v44  ;;  %v2473_v49 = vpop.f32.mrb[49].mxu1  ;;  %v1726_v50 = vpop.f32.mrb[50].mxu0 }
0x176d   :  { %v1772_v51 = vpop.f32.mrb[50].mxu1  ;;  %v2466_v52 = vpop.f32.mrb[51].mxu0 }
0x176e   :  { %v1775_v54 = vadd.f32 %v2682_v53, %v1770_v47  ;;  %v2474_v39 = vpop.f32.mrb[51].mxu1 }
0x1770   :  { %2667 = vtanh.f32 %v1775_v54  ;;  %v2163_v55 = vmul.f32 -1.442695, %v1775_v54 }
0x1772   :  { %2669 = vpow2.f32 %v2163_v55  ;;  %v1849_v15 = vpop.f32.mrb[52].mxu0 }
0x1773   :  { %v2479_v16 = vpop.f32.mrb[53].mxu0 }
0x1774   :  { %v1852_v12 = vpop.f32.mrb[54].mxu0 }
0x1775   :  { %v2480_v29 = vpop.f32.mrb[55].mxu0 }
0x177a   :  { %v2668_v11 = vpop.eup %2667 }
0x177b   :  { %1785 = vrot.lane.b32.xlu0 %v2668_v11, %s2858_s15 }
0x177c   :  { %v2670_v56 = vpop.eup %2669 }
0x177d   :  { %v1779_v57 = vadd.f32 1.0, %v2670_v56 }
0x177f   :  { %2671 = vrcp.f32 %v1779_v57 }
0x1789   :  { %v2672_v58 = vpop.eup %2671 }
0x178a   :  { %v1783_v61 = vmul.f32 %v2672_v58, %v1607_v7  ;;  %v2546_v7 = vld [vmem:[%s3468_s13 + $0x18] sm:$0xff]   ;;  %s2097_s13 = sshll.u32 %s2859_s23, 4  ;;  %s2098_s13 = int_to_ptr.vmem [resolvable:$true] %s2097_s13 }
0x178b   :  { %s2815_s12 = scalar_lea.vmem %s2098_s13, 128  ;;  %p2820_p7 = scmp.lt.s32.totalorder %s2098_s13, %s2098_s13 }
0x178c   :  { %p2816_p6 = scmp.ne.s32.totalorder %s2098_s13, %s2815_s12  ;;  %p2821_p8 = scmp.lt.s32.totalorder %s2815_s12, %s2815_s12 }
0x178e   :  { %p2822_p9 = por %p2821_p8, %p2820_p7 }
0x1790   :  { %p2823_p10 = pnand %p2822_p9, %p2816_p6 }
0x17ed   :  { %v1786_v59 = vpop.permute.xlu0 %1785 }
0x17ee   :  { %v1788_v60 = vmul.f32 %v2672_v58, %v1786_v59 }
0x17f0   :  { %1790 = vrot.lane.b32.xlu1 %v1788_v60, %s2858_s15 }
0x1862   :  { %v1791_v62 = vpop.permute.xlu1 %1790 }
0x1863   :  { %v1793_v63 = vadd.f32 %v1791_v62, %v1783_v61 }
0x1865   :  { %2673 = vtanh.f32 %v1793_v63 }
0x186f   :  { %v2674_v5 = vpop.eup %2673 }
0x1870   :  { %1796 = vrot.lane.b32.xlu0 %v2674_v5, %s2858_s15 }
0x18e2   :  { %v1797_v10 = vpop.permute.xlu0 %1796 }
0x18e3   :  { %v1799_v32 = vmul.f32 %v2672_v58, %v1797_v10 }
0x18e5   :  { %v1800_v13 = vpack.c.bf16 %v1799_v32, %v1799_v32 }
0x18e7   :  { %1856 = vrot.lane.b32.xlu1 %v1800_v13, %s2848_s28 }
0x1959   :  { %v1857_v14 = vpop.permute.xlu1 %1856 }
0x195a   :  { %2486 = vmatmul.mubr.msk.bf16.vlgmr.msra.gmra.mrb[52].mxu1 %vm285_vm2, %v1857_v14 }
0x195b   :  { %2509 = vmatprep.mubr.msk.bf16.mxu1 %vm2856_vm0, %v2855_v0  ;;  %2502 = vmatpush3.bf16.msra.mxu1 %v2543_v2 }
0x195c   :  { %2503 = vmatprep.subr.bf16.mxu1 %v2855_v0 }
0x195f   :  { %2504 = vmatpush3.bf16.msra.mxu1 %v2544_v19 }
0x1960   :  { %2505 = vmatprep.subr.bf16.mxu1 %v2855_v0 }
0x1963   :  { %2506 = vmatpush3.bf16.msra.mxu1 %v2545_v18 }
0x1964   :  { %2507 = vmatprep.subr.bf16.mxu1 %v2855_v0  ;;  %v2175_v0 = vld [vmem:[%s3469_s14] ss:$0 sm:$0xff] }
0x1967   :  { %2508 = vmatpush3.bf16.msra.mxu1 %v2546_v7 }
0x1a2d   :  { %v1907_v33 = vpop.f32.mrb[52].mxu1 }
0x1a2e   :  { %v1908_v20 = vadd.f32 %v1907_v33, %v1849_v15  ;;  %v2487_v22 = vpop.f32.mrb[53].mxu1 }
0x1a2f   :  { %v1910_v21 = vpop.f32.mrb[54].mxu1 }
0x1a30   :  { %v1920_v23 = vadd.f32 %v2168_v17, %v1908_v20  ;;  %v2488_v24 = vpop.f32.mrb[55].mxu1 }
0x1a32   :  { %v1921_v25 = vmax.f32 %v1920_v23, 0.0 }
0x1a34   :  { %v1922_v26 = vpack.c.bf16 %v1921_v25, %v1921_v25 }
0x1a36   :  { %2498 = vmatmul.mubr.msk.bf16.vlgmr.msra.gmra.mrb[56].mxu0 %vm1962_vm5, %v1922_v26 }
0x1b09   :  { %v2000_v27 = vpop.f32.mrb[56].mxu0 }
0x1b0a   :  { %v2001_v30 = vadd.f32 %v2169_v38, %v2000_v27  ;;  %v2499_v31 = vpop.f32.mrb[57].mxu0 }
0x1b0b   :  { %v2003_v34 = vpop.f32.mrb[58].mxu0 }
0x1b0c   :  { %v2006_v35 = vmax.f32 %v2001_v30, 0.0  ;;  %v2500_v36 = vpop.f32.mrb[59].mxu0 }
0x1b0e   :  { %v2007_v37 = vpack.c.bf16 %v2006_v35, %v2006_v35 }
0x1b10   :  { %2510 = vmatmul.mubr.msk.bf16.vlgmr.msra.gmra.mrb[56].mxu1 %vm1962_vm5, %v2007_v37 }
0x1be3   :  { %v2084_v42 = vpop.f32.mrb[56].mxu1 }
0x1be4   :  { %v2085_v43 = vadd.f32 %v2175_v0, %v2084_v42  ;;  %v2511_v41 = vpop.f32.mrb[57].mxu1 }
0x1be5   :  { %v2087_v44 = vpop.f32.mrb[58].mxu1 }
0x1be6   :  { %2090 = vst [vmem:[#allocation14] sm:$0xff] %v2085_v43  ;;  %v2512_v45 = vpop.f32.mrb[59].mxu1 }
0x1be7   :  { %2826 = shalt.err (!%p2823_p10)
}
0x1be8   :  { %s3473_s21 = sld [smem:[#allocation20_spill]] }
0x1bee   :  { %s2827_s14 = scalar_lea.hbm %s3473_s21, 128 }
0x1bef   :  { %p2828_p11 = scmp.ne.s32.totalorder %s3473_s21, %s2827_s14  ;;  %p2831_p12 = scmp.lt.u32.totalorder %s2827_s14, %s3473_s21 }
0x1bf1   :  { %p2833_p13 = pnand %p2831_p12, %p2828_p11 }
0x1bf3   :  { %2836 = shalt.err (!%p2833_p13)
}
0x1bf4   :  { %2100 = dma.vmem_to_hbm [thread:$0]  %s2098_s13, 128, %s3473_s21, [#allocation5]  }
0x1bf5   :  { %2845 = dma.done.wait [#allocation5], 128  }
0x1bf6   :  { %2846 = vsyncadd [#allocation5], 4294967168 }
0x1bf7   :  { %2104 = vsyncpa [#allocation4], 1 }
0x1bf8   :  { %2105 = vsyncpa [#allocation7], 1 }
0x1bf9   :  { %2106 = vsyncpa [#allocation10], 1 }
0x1bfa   :  { %2107 = vsyncpa [#allocation13], 1 }
0x1bfb   :  { %2108 = vsyncpa [#allocation5], 1 }

</bundles_post_ra>
